<compile_context>
chip_gen: v7x
topology: tpu7x:2x2x1
jax: 0.10.0
libtpu: 0.0.40
codegen_flags: <defaults>
</compile_context>

<pallas_src>
import functools

import jax
import jax.numpy as jnp
from jax.experimental import pallas as pl
from jax.experimental.pallas import tpu as pltpu
from jax.scipy.special import erf


# ------------------------ in-kernel math helpers -----------------------------
def _gelu_tanh(x):
    # tanh-approximation GELU: tanh executes on the EUP, keeping the VALU free.
    c = 0.7978845608028654  # sqrt(2/pi)
    return 0.5 * x * (1.0 + jnp.tanh(c * (x + 0.044715 * x * x * x)))


def _gelu_exact(x):
    # exact-erf GELU (torch.nn.GELU() default) -- used only in the pure-JAX
    # reference outside the kernel.
    return 0.5 * x * (1.0 + erf(x * 0.7071067811865476))


def _layer_norm(x, g, b, eps=1e-5):
    mu = jnp.mean(x, axis=-1, keepdims=True)
    var = jnp.mean((x - mu) ** 2, axis=-1, keepdims=True)
    return (x - mu) * jax.lax.rsqrt(var + eps) * g + b


# ------------------------------- kernel ---------------------------------------
def make_encoder_kernel(n_block, n_head):
    def kernel(inp_ref,            # (Bt, L, in_dim)
               enc_ln_ref,         # (2, in_dim)        input-encoder LN gamma/beta
               enc_w_ref,          # (in_dim, D)        input-encoder linear weight
               gvec_ref,           # (8, D)  rows: enc_b, ln_g, ln_b, h_b1,
                                   #               h_ln_g, h_ln_b, h_w2_row, h_b2
               hw1_ref,            # (D, D)             value-head first linear
               wqkv_ref,           # (n_block, D, 3D)   fused q/k/v weights
               bqkv_ref,           # (n_block, 1, 3D)   fused q/k/v biases
               wblk_ref,           # (n_block, 3, D, D) [proj, mlp_w1, mlp_w2]
               bvec_ref,           # (n_block, 7, D)    [bp, b1, b2, ln1_g, ln1_b,
                                   #                      ln2_g, ln2_b]
               vloc_ref,           # (Bt, L)   lane-dense value output
               rep_ref):           # (Bt, L, D)
        Bt, L, _ = inp_ref.shape
        D = hw1_ref.shape[0]
        hd = D // n_head
        N = Bt * L
        scale = 1.0 / float(hd) ** 0.5

        # ---- input (obs/state) encoder: LayerNorm -> Linear -> GELU ----
        x = inp_ref[...].reshape(N, -1)
        x = _layer_norm(x, enc_ln_ref[0:1, :], enc_ln_ref[1:2, :])
        x = _gelu_tanh(jnp.dot(x, enc_w_ref[...],
                               preferred_element_type=jnp.float32)
                       + gvec_ref[0:1, :])

        # ---- Encoder.ln ----
        x = _layer_norm(x, gvec_ref[1:2, :], gvec_ref[2:3, :])

        # ---- transformer blocks (static unroll) ----
        for blk in range(n_block):
            bvec = bvec_ref[blk]                                   # (7, D)

            # fused QKV projection: one (N, D) @ (D, 3D) MXU push
            qkv = (jnp.dot(x, wqkv_ref[blk],
                           preferred_element_type=jnp.float32)
                   + bqkv_ref[blk])                                # (N, 3D)

            heads = []
            for h in range(n_head):                                # static unroll
                o = h * hd
                qh = qkv[:, o:o + hd].reshape(Bt, L, hd)
                kh = qkv[:, D + o:D + o + hd].reshape(Bt, L, hd)
                vh = qkv[:, 2 * D + o:2 * D + o + hd].reshape(Bt, L, hd)
                att = jnp.einsum('bqd,bkd->bqk', qh, kh,
                                 preferred_element_type=jnp.float32) * scale
                att = jnp.exp(att - jnp.max(att, axis=-1, keepdims=True))
                att = att * pl.reciprocal(
                    jnp.sum(att, axis=-1, keepdims=True), approx=True)
                yh = jnp.einsum('bqk,bkd->bqd', att, vh,
                                preferred_element_type=jnp.float32)
                heads.append(yh.reshape(N, hd))
            y = jnp.concatenate(heads, axis=-1)                    # (N, D)
            y = (jnp.dot(y, wblk_ref[blk, 0],
                         preferred_element_type=jnp.float32)
                 + bvec[0:1, :])

            # x = ln1(x + attn(x))
            x = _layer_norm(x + y, bvec[3:4, :], bvec[4:5, :])

            # MLP: Linear -> GELU -> Linear
            m = _gelu_tanh(jnp.dot(x, wblk_ref[blk, 1],
                                   preferred_element_type=jnp.float32)
                           + bvec[1:2, :])
            m = (jnp.dot(m, wblk_ref[blk, 2],
                         preferred_element_type=jnp.float32)
                 + bvec[2:3, :])

            # x = ln2(x + mlp(x))
            x = _layer_norm(x + m, bvec[5:6, :], bvec[6:7, :])

        rep_ref[...] = x.reshape(Bt, L, D)

        # ---- value head: Linear -> GELU -> LayerNorm -> Linear(D, 1) ----
        hv = _gelu_tanh(jnp.dot(x, hw1_ref[...],
                                preferred_element_type=jnp.float32)
                        + gvec_ref[3:4, :])
        hv = _layer_norm(hv, gvec_ref[4:5, :], gvec_ref[5:6, :])
        hv3 = hv.reshape(Bt, L, D)
        # final (D -> 1) linear as a lane-reduce; output stays lane-dense (Bt, L)
        vloc_ref[...] = (jnp.sum(hv3 * gvec_ref[6:7, :], axis=-1)
                         + gvec_ref[7:8, 0:1])

    return kernel


# --------------------------- parameter init -----------------------------------
def init_encoder_params(key, state_dim, obs_dim, n_block, n_embd):
    def nrm(k, shape, scale=0.02):
        return (scale * jax.random.normal(k, shape)).astype(jnp.float32)

    ks = iter(jax.random.split(key, 32))
    p = {}
    # state encoder
    p["s_ln_g"] = jnp.ones((1, state_dim), jnp.float32)
    p["s_ln_b"] = jnp.zeros((1, state_dim), jnp.float32)
    p["s_w"] = nrm(next(ks), (state_dim, n_embd))
    p["s_b"] = jnp.zeros((1, n_embd), jnp.float32)
    # obs encoder
    p["o_ln_g"] = jnp.ones((1, obs_dim), jnp.float32)
    p["o_ln_b"] = jnp.zeros((1, obs_dim), jnp.float32)
    p["o_w"] = nrm(next(ks), (obs_dim, n_embd))
    p["o_b"] = jnp.zeros((1, n_embd), jnp.float32)
    # Encoder.ln
    p["ln_g"] = jnp.ones((1, n_embd), jnp.float32)
    p["ln_b"] = jnp.zeros((1, n_embd), jnp.float32)
    # per-block params (stacked along n_block)
    p["ln1_g"] = jnp.ones((n_block, n_embd), jnp.float32)
    p["ln1_b"] = jnp.zeros((n_block, n_embd), jnp.float32)
    p["ln2_g"] = jnp.ones((n_block, n_embd), jnp.float32)
    p["ln2_b"] = jnp.zeros((n_block, n_embd), jnp.float32)
    for name in ("wk", "wq", "wv", "wp", "w1", "w2"):
        p[name] = nrm(next(ks), (n_block, n_embd, n_embd))
    for name in ("bk", "bq", "bv", "bp", "b1", "b2"):
        p[name] = jnp.zeros((n_block, n_embd), jnp.float32)
    # value head
    p["h_w1"] = nrm(next(ks), (n_embd, n_embd))
    p["h_b1"] = jnp.zeros((1, n_embd), jnp.float32)
    p["h_ln_g"] = jnp.ones((1, n_embd), jnp.float32)
    p["h_ln_b"] = jnp.zeros((1, n_embd), jnp.float32)
    p["h_w2"] = nrm(next(ks), (n_embd, 1))
    p["h_b2"] = jnp.zeros((1, 1), jnp.float32)
    return p


# ------------------------------- wrapper ---------------------------------------
def encoder_forward(params, state, obs, *, n_block, n_head, encode_state=False,
                    num_chunks=1):
    """num_chunks=1 is best on v5e/v6e (single TensorCore); use num_chunks=2 on
    v7x so each TensorCore gets one batch chunk (requires B % num_chunks == 0)."""
    if encode_state:
        inp = state
        e_ln_g, e_ln_b, e_w, e_b = (params["s_ln_g"], params["s_ln_b"],
                                    params["s_w"], params["s_b"])
    else:
        inp = obs
        e_ln_g, e_ln_b, e_w, e_b = (params["o_ln_g"], params["o_ln_b"],
                                    params["o_w"], params["o_b"])

    B, L, in_dim = inp.shape
    D = params["ln_g"].shape[-1]
    assert B % num_chunks == 0
    Bt = B // num_chunks

    # --- pack the many tiny parameters into a handful of stacked arrays ---
    enc_ln = jnp.concatenate([e_ln_g, e_ln_b], axis=0)                 # (2, in_dim)
    gvec = jnp.concatenate(
        [e_b, params["ln_g"], params["ln_b"], params["h_b1"],
         params["h_ln_g"], params["h_ln_b"], params["h_w2"].T,
         jnp.broadcast_to(params["h_b2"], (1, D))], axis=0)            # (8, D)
    wqkv = jnp.concatenate([params["wq"], params["wk"], params["wv"]],
                           axis=-1)                                     # (nb, D, 3D)
    bqkv = jnp.concatenate([params["bq"], params["bk"], params["bv"]],
                           axis=-1)[:, None, :]                         # (nb, 1, 3D)
    wblk = jnp.stack([params["wp"], params["w1"], params["w2"]], axis=1)  # (nb,3,D,D)
    bvec = jnp.stack([params["bp"], params["b1"], params["b2"],
                      params["ln1_g"], params["ln1_b"],
                      params["ln2_g"], params["ln2_b"]], axis=1)        # (nb, 7, D)

    ordered = [inp, enc_ln, e_w, gvec, params["h_w1"], wqkv, bqkv, wblk, bvec]

    def const_map(ndim):
        return lambda b: (0,) * ndim

    in_specs = [pl.BlockSpec((Bt, L, in_dim), lambda b: (b, 0, 0))]
    for a in ordered[1:]:
        in_specs.append(pl.BlockSpec(a.shape, const_map(a.ndim)))

    out_specs = [pl.BlockSpec((Bt, L), lambda b: (b, 0)),
                 pl.BlockSpec((Bt, L, D), lambda b: (b, 0, 0))]
    out_shape = (jax.ShapeDtypeStruct((B, L), jnp.float32),
                 jax.ShapeDtypeStruct((B, L, D), jnp.float32))

    v2d, rep = pl.pallas_call(
        make_encoder_kernel(n_block, n_head),
        out_shape=out_shape,
        grid_spec=pltpu.PrefetchScalarGridSpec(
            num_scalar_prefetch=0,
            grid=(num_chunks,),
            in_specs=in_specs,
            out_specs=out_specs),
        compiler_params=pltpu.CompilerParams(
            dimension_semantics=("parallel",)),
    )(*ordered)

    return v2d[:, :, None], rep        # restore PyTorch (B, L, 1) value shape


# --------------------------- pure-JAX reference --------------------------------
# Faithful to the PyTorch module: exact-erf GELU and exact softmax.
def _ref_forward(params, state, obs, *, n_block, n_head, encode_state=False):
    if encode_state:
        inp, (g, b, w, bias) = state, (params["s_ln_g"], params["s_ln_b"],
                                       params["s_w"], params["s_b"])
    else:
        inp, (g, b, w, bias) = obs, (params["o_ln_g"], params["o_ln_b"],
                                     params["o_w"], params["o_b"])

    def one(x):                                    # x: (L, in_dim)
        x = _gelu_exact(jnp.dot(_layer_norm(x, g, b), w) + bias)
        x = _layer_norm(x, params["ln_g"], params["ln_b"])
        L, D = x.shape
        hd = D // n_head
        for blk in range(n_block):
            k = jnp.dot(x, params["wk"][blk]) + params["bk"][blk:blk + 1]
            q = jnp.dot(x, params["wq"][blk]) + params["bq"][blk:blk + 1]
            v = jnp.dot(x, params["wv"][blk]) + params["bv"][blk:blk + 1]
            heads = []
            for h in range(n_head):
                sl = slice(h * hd, (h + 1) * hd)
                att = (q[:, sl] @ k[:, sl].T) / (hd ** 0.5)
                att = jax.nn.softmax(att, axis=-1)
                heads.append(att @ v[:, sl])
            y = (jnp.dot(jnp.concatenate(heads, axis=-1), params["wp"][blk])
                 + params["bp"][blk:blk + 1])
            x = _layer_norm(x + y, params["ln1_g"][blk:blk + 1],
                            params["ln1_b"][blk:blk + 1])
            m = _gelu_exact(jnp.dot(x, params["w1"][blk])
                            + params["b1"][blk:blk + 1])
            m = jnp.dot(m, params["w2"][blk]) + params["b2"][blk:blk + 1]
            x = _layer_norm(x + m, params["ln2_g"][blk:blk + 1],
                            params["ln2_b"][blk:blk + 1])
        hv = _gelu_exact(jnp.dot(x, params["h_w1"]) + params["h_b1"])
        hv = _layer_norm(hv, params["h_ln_g"], params["h_ln_b"])
        return jnp.dot(hv, params["h_w2"]) + params["h_b2"], x

    return jax.vmap(one)(inp)


# --------------------------------- main -----------------------------------------
if __name__ == "__main__":
    B, n_agent = 2, 8
    state_dim, obs_dim = 24, 16
    n_block, n_embd, n_head = 2, 32, 2
    encode_state = False

    key = jax.random.PRNGKey(0)
    k_p, k_s, k_o = jax.random.split(key, 3)
    params = init_encoder_params(k_p, state_dim, obs_dim, n_block, n_embd)
    state = jax.random.normal(k_s, (B, n_agent, state_dim), jnp.float32)
    obs = jax.random.normal(k_o, (B, n_agent, obs_dim), jnp.float32)

    fwd = jax.jit(functools.partial(encoder_forward, n_block=n_block,
                                    n_head=n_head, encode_state=encode_state,
                                    num_chunks=1))
    v_loc, rep = fwd(params, state, obs)
    jax.block_until_ready((v_loc, rep))

    v_ref, rep_ref = _ref_forward(params, state, obs, n_block=n_block,
                                  n_head=n_head, encode_state=encode_state)
    assert v_loc.shape == (B, n_agent, 1) and rep.shape == (B, n_agent, n_embd)
    # tolerance covers the in-kernel tanh-GELU + approx-reciprocal softmax
    # (both <~1e-3 deviation from the exact-erf / exact-division reference)
    assert jnp.allclose(v_loc, v_ref, atol=2e-3, rtol=2e-3)
    assert jnp.allclose(rep, rep_ref, atol=2e-3, rtol=2e-3)

    print("KERNEL_OK")
</pallas_src>

<mosaic_0001>
module attributes {stable_mosaic.version = 11 : i64} {
  func.func @kernel(%arg0: i32, %arg1: memref<2x8x16xf32, #tpu.memory_space<vmem>>, %arg2: memref<2x16xf32, #tpu.memory_space<vmem>>, %arg3: memref<16x32xf32, #tpu.memory_space<vmem>>, %arg4: memref<8x32xf32, #tpu.memory_space<vmem>>, %arg5: memref<32x32xf32, #tpu.memory_space<vmem>>, %arg6: memref<2x32x96xf32, #tpu.memory_space<vmem>>, %arg7: memref<2x1x96xf32, #tpu.memory_space<vmem>>, %arg8: memref<2x3x32x32xf32, #tpu.memory_space<vmem>>, %arg9: memref<2x7x32xf32, #tpu.memory_space<vmem>>, %arg10: memref<2x8xf32, #tpu.memory_space<vmem>>, %arg11: memref<2x8x32xf32, #tpu.memory_space<vmem>>) attributes {dimension_semantics = [#tpu.dimension_semantics<parallel>], iteration_bounds = array<i64: 1>, scalar_prefetch = 0 : i64, scratch_operands = 0 : i64, tpu.core_type = #tpu.core_type<tc>, window_params = [{transform_indices = @transform_0, window_bounds = array<i64: 2, 8, 16>}, {pipeline_mode = #tpu.pipeline_mode<synchronous>, transform_indices = @transform_1, window_bounds = array<i64: 2, 16>}, {pipeline_mode = #tpu.pipeline_mode<synchronous>, transform_indices = @transform_2, window_bounds = array<i64: 16, 32>}, {pipeline_mode = #tpu.pipeline_mode<synchronous>, transform_indices = @transform_3, window_bounds = array<i64: 8, 32>}, {pipeline_mode = #tpu.pipeline_mode<synchronous>, transform_indices = @transform_4, window_bounds = array<i64: 32, 32>}, {pipeline_mode = #tpu.pipeline_mode<synchronous>, transform_indices = @transform_5, window_bounds = array<i64: 2, 32, 96>}, {pipeline_mode = #tpu.pipeline_mode<synchronous>, transform_indices = @transform_6, window_bounds = array<i64: 2, 1, 96>}, {pipeline_mode = #tpu.pipeline_mode<synchronous>, transform_indices = @transform_7, window_bounds = array<i64: 2, 3, 32, 32>}, {pipeline_mode = #tpu.pipeline_mode<synchronous>, transform_indices = @transform_8, window_bounds = array<i64: 2, 7, 32>}, {transform_indices = @transform_9, window_bounds = array<i64: 2, 8>}, {transform_indices = @transform_10, window_bounds = array<i64: 2, 8, 32>}]} {
    %c0 = arith.constant 0 : index
    %c0_0 = arith.constant 0 : index
    %c0_1 = arith.constant 0 : index
    %0 = vector.load %arg1[%c0, %c0_0, %c0_1] : memref<2x8x16xf32, #tpu.memory_space<vmem>>, vector<2x8x16xf32>
    %1 = vector.shape_cast %0 : vector<2x8x16xf32> to vector<16x16xf32>
    %c0_2 = arith.constant 0 : index
    %c0_3 = arith.constant 0 : index
    %2 = vector.load %arg2[%c0_2, %c0_3] : memref<2x16xf32, #tpu.memory_space<vmem>>, vector<1x16xf32>
    %c1 = arith.constant 1 : index
    %c0_4 = arith.constant 0 : index
    %3 = vector.load %arg2[%c1, %c0_4] : memref<2x16xf32, #tpu.memory_space<vmem>>, vector<1x16xf32>
    %cst = arith.constant dense<0.000000e+00> : vector<16xf32>
    %4 = vector.multi_reduction <add>, %1, %cst [1] : vector<16x16xf32> to vector<16xf32>
    %5 = vector.shape_cast %4 : vector<16xf32> to vector<16x1xf32>
    %cst_5 = arith.constant 1.600000e+01 : f32
    %6 = vector.broadcast %cst_5 : f32 to vector<16x1xf32>
    %7 = arith.divf %5, %6 : vector<16x1xf32>
    %8 = vector.broadcast %7 : vector<16x1xf32> to vector<16x16xf32>
    %9 = arith.subf %1, %8 : vector<16x16xf32>
    %10 = arith.mulf %9, %9 : vector<16x16xf32>
    %cst_6 = arith.constant dense<0.000000e+00> : vector<16xf32>
    %11 = vector.multi_reduction <add>, %10, %cst_6 [1] : vector<16x16xf32> to vector<16xf32>
    %12 = vector.shape_cast %11 : vector<16xf32> to vector<16x1xf32>
    %cst_7 = arith.constant 1.600000e+01 : f32
    %13 = vector.broadcast %cst_7 : f32 to vector<16x1xf32>
    %14 = arith.divf %12, %13 : vector<16x1xf32>
    %15 = vector.broadcast %7 : vector<16x1xf32> to vector<16x16xf32>
    %16 = arith.subf %1, %15 : vector<16x16xf32>
    %cst_8 = arith.constant 9.99999974E-6 : f32
    %17 = vector.broadcast %cst_8 : f32 to vector<16x1xf32>
    %18 = arith.addf %14, %17 : vector<16x1xf32>
    %19 = math.rsqrt %18 : vector<16x1xf32>
    %20 = vector.broadcast %19 : vector<16x1xf32> to vector<16x16xf32>
    %21 = arith.mulf %16, %20 : vector<16x16xf32>
    %22 = vector.broadcast %2 : vector<1x16xf32> to vector<16x16xf32>
    %23 = arith.mulf %21, %22 : vector<16x16xf32>
    %24 = vector.broadcast %3 : vector<1x16xf32> to vector<16x16xf32>
    %25 = arith.addf %23, %24 : vector<16x16xf32>
    %c0_9 = arith.constant 0 : index
    %c0_10 = arith.constant 0 : index
    %26 = vector.load %arg3[%c0_9, %c0_10] : memref<16x32xf32, #tpu.memory_space<vmem>>, vector<16x32xf32>
    %cst_11 = arith.constant dense<0.000000e+00> : vector<16x32xf32>
    %27 = tpu.matmul %25, %26, %cst_11 {dimension_numbers = #tpu.dot_dimension_numbers<[1], [0], [0], [1], [0, 0, 1, 1], [], []>} : vector<16x16xf32>, vector<16x32xf32>, vector<16x32xf32> -> vector<16x32xf32>
    %c0_12 = arith.constant 0 : index
    %c0_13 = arith.constant 0 : index
    %28 = vector.load %arg4[%c0_12, %c0_13] : memref<8x32xf32, #tpu.memory_space<vmem>>, vector<1x32xf32>
    %29 = vector.broadcast %28 : vector<1x32xf32> to vector<16x32xf32>
    %30 = arith.addf %27, %29 : vector<16x32xf32>
    %cst_14 = arith.constant 5.000000e-01 : f32
    %31 = vector.broadcast %cst_14 : f32 to vector<16x32xf32>
    %32 = arith.mulf %31, %30 : vector<16x32xf32>
    %cst_15 = arith.constant 4.471500e-02 : f32
    %33 = vector.broadcast %cst_15 : f32 to vector<16x32xf32>
    %34 = arith.mulf %33, %30 : vector<16x32xf32>
    %35 = arith.mulf %34, %30 : vector<16x32xf32>
    %36 = arith.mulf %35, %30 : vector<16x32xf32>
    %37 = arith.addf %30, %36 : vector<16x32xf32>
    %cst_16 = arith.constant 0.797884583 : f32
    %38 = vector.broadcast %cst_16 : f32 to vector<16x32xf32>
    %39 = arith.mulf %38, %37 : vector<16x32xf32>
    %40 = math.tanh %39 : vector<16x32xf32>
    %cst_17 = arith.constant 1.000000e+00 : f32
    %41 = vector.broadcast %cst_17 : f32 to vector<16x32xf32>
    %42 = arith.addf %41, %40 : vector<16x32xf32>
    %43 = arith.mulf %32, %42 : vector<16x32xf32>
    %c1_18 = arith.constant 1 : index
    %c0_19 = arith.constant 0 : index
    %44 = vector.load %arg4[%c1_18, %c0_19] : memref<8x32xf32, #tpu.memory_space<vmem>>, vector<1x32xf32>
    %c2 = arith.constant 2 : index
    %c0_20 = arith.constant 0 : index
    %45 = vector.load %arg4[%c2, %c0_20] : memref<8x32xf32, #tpu.memory_space<vmem>>, vector<1x32xf32>
    %cst_21 = arith.constant dense<0.000000e+00> : vector<16xf32>
    %46 = vector.multi_reduction <add>, %43, %cst_21 [1] : vector<16x32xf32> to vector<16xf32>
    %47 = vector.shape_cast %46 : vector<16xf32> to vector<16x1xf32>
    %cst_22 = arith.constant 3.200000e+01 : f32
    %48 = vector.broadcast %cst_22 : f32 to vector<16x1xf32>
    %49 = arith.divf %47, %48 : vector<16x1xf32>
    %50 = vector.broadcast %49 : vector<16x1xf32> to vector<16x32xf32>
    %51 = arith.subf %43, %50 : vector<16x32xf32>
    %52 = arith.mulf %51, %51 : vector<16x32xf32>
    %cst_23 = arith.constant dense<0.000000e+00> : vector<16xf32>
    %53 = vector.multi_reduction <add>, %52, %cst_23 [1] : vector<16x32xf32> to vector<16xf32>
    %54 = vector.shape_cast %53 : vector<16xf32> to vector<16x1xf32>
    %cst_24 = arith.constant 3.200000e+01 : f32
    %55 = vector.broadcast %cst_24 : f32 to vector<16x1xf32>
    %56 = arith.divf %54, %55 : vector<16x1xf32>
    %57 = vector.broadcast %49 : vector<16x1xf32> to vector<16x32xf32>
    %58 = arith.subf %43, %57 : vector<16x32xf32>
    %cst_25 = arith.constant 9.99999974E-6 : f32
    %59 = vector.broadcast %cst_25 : f32 to vector<16x1xf32>
    %60 = arith.addf %56, %59 : vector<16x1xf32>
    %61 = math.rsqrt %60 : vector<16x1xf32>
    %62 = vector.broadcast %61 : vector<16x1xf32> to vector<16x32xf32>
    %63 = arith.mulf %58, %62 : vector<16x32xf32>
    %64 = vector.broadcast %44 : vector<1x32xf32> to vector<16x32xf32>
    %65 = arith.mulf %63, %64 : vector<16x32xf32>
    %66 = vector.broadcast %45 : vector<1x32xf32> to vector<16x32xf32>
    %67 = arith.addf %65, %66 : vector<16x32xf32>
    %c0_26 = arith.constant 0 : index
    %c0_27 = arith.constant 0 : index
    %c0_28 = arith.constant 0 : index
    %68 = vector.load %arg9[%c0_26, %c0_27, %c0_28] : memref<2x7x32xf32, #tpu.memory_space<vmem>>, vector<1x7x32xf32>
    %69 = vector.shape_cast %68 : vector<1x7x32xf32> to vector<7x32xf32>
    %c0_29 = arith.constant 0 : index
    %c0_30 = arith.constant 0 : index
    %c0_31 = arith.constant 0 : index
    %70 = vector.load %arg6[%c0_29, %c0_30, %c0_31] : memref<2x32x96xf32, #tpu.memory_space<vmem>>, vector<1x32x96xf32>
    %71 = vector.shape_cast %70 : vector<1x32x96xf32> to vector<32x96xf32>
    %cst_32 = arith.constant dense<0.000000e+00> : vector<16x96xf32>
    %72 = tpu.matmul %67, %71, %cst_32 {dimension_numbers = #tpu.dot_dimension_numbers<[1], [0], [0], [1], [0, 0, 1, 1], [], []>} : vector<16x32xf32>, vector<32x96xf32>, vector<16x96xf32> -> vector<16x96xf32>
    %c0_33 = arith.constant 0 : index
    %c0_34 = arith.constant 0 : index
    %c0_35 = arith.constant 0 : index
    %73 = vector.load %arg7[%c0_33, %c0_34, %c0_35] : memref<2x1x96xf32, #tpu.memory_space<vmem>>, vector<1x1x96xf32>
    %74 = vector.shape_cast %73 : vector<1x1x96xf32> to vector<1x96xf32>
    %75 = vector.broadcast %74 : vector<1x96xf32> to vector<16x96xf32>
    %76 = arith.addf %72, %75 : vector<16x96xf32>
    %77 = vector.extract_strided_slice %76 {offsets = [0, 0], sizes = [16, 16], strides = [1, 1]} : vector<16x96xf32> to vector<16x16xf32>
    %78 = vector.shape_cast %77 : vector<16x16xf32> to vector<2x8x16xf32>
    %79 = vector.extract_strided_slice %76 {offsets = [0, 32], sizes = [16, 16], strides = [1, 1]} : vector<16x96xf32> to vector<16x16xf32>
    %80 = vector.shape_cast %79 : vector<16x16xf32> to vector<2x8x16xf32>
    %81 = vector.extract_strided_slice %76 {offsets = [0, 64], sizes = [16, 16], strides = [1, 1]} : vector<16x96xf32> to vector<16x16xf32>
    %82 = vector.shape_cast %81 : vector<16x16xf32> to vector<2x8x16xf32>
    "tpu.trace_start"() <{level = 10 : i32, message = "bqd,bkd->bqk"}> : () -> ()
    %cst_36 = arith.constant dense<0.000000e+00> : vector<2x8x8xf32>
    %83 = tpu.matmul %78, %80, %cst_36 {dimension_numbers = #tpu.dot_dimension_numbers<[2], [2], [1], [1], [0, 0, 0, 1, 1, 1], [0], [0]>} : vector<2x8x16xf32>, vector<2x8x16xf32>, vector<2x8x8xf32> -> vector<2x8x8xf32>
    "tpu.trace_stop"() : () -> ()
    %cst_37 = arith.constant 2.500000e-01 : f32
    %84 = vector.broadcast %cst_37 : f32 to vector<2x8x8xf32>
    %85 = arith.mulf %83, %84 : vector<2x8x8xf32>
    %cst_38 = arith.constant dense<0xFF800000> : vector<2x8xf32>
    %86 = vector.multi_reduction <maximumf>, %85, %cst_38 [2] : vector<2x8x8xf32> to vector<2x8xf32>
    %87 = vector.shape_cast %86 : vector<2x8xf32> to vector<2x8x1xf32>
    %88 = vector.broadcast %87 : vector<2x8x1xf32> to vector<2x8x8xf32>
    %89 = arith.subf %85, %88 : vector<2x8x8xf32>
    %90 = math.exp %89 : vector<2x8x8xf32>
    %cst_39 = arith.constant dense<0.000000e+00> : vector<2x8xf32>
    %91 = vector.multi_reduction <add>, %90, %cst_39 [2] : vector<2x8x8xf32> to vector<2x8xf32>
    %92 = vector.shape_cast %91 : vector<2x8xf32> to vector<2x8x1xf32>
    %93 = tpu.reciprocal %92 {approx = true} : vector<2x8x1xf32> -> vector<2x8x1xf32>
    %94 = vector.broadcast %93 : vector<2x8x1xf32> to vector<2x8x8xf32>
    %95 = arith.mulf %90, %94 : vector<2x8x8xf32>
    "tpu.trace_start"() <{level = 10 : i32, message = "bqk,bkd->bqd"}> : () -> ()
    %cst_40 = arith.constant dense<0.000000e+00> : vector<2x8x16xf32>
    %96 = tpu.matmul %95, %82, %cst_40 {dimension_numbers = #tpu.dot_dimension_numbers<[2], [1], [1], [2], [0, 0, 0, 1, 1, 2], [0], [0]>} : vector<2x8x8xf32>, vector<2x8x16xf32>, vector<2x8x16xf32> -> vector<2x8x16xf32>
    "tpu.trace_stop"() : () -> ()
    %97 = vector.shape_cast %96 : vector<2x8x16xf32> to vector<16x16xf32>
    %98 = vector.extract_strided_slice %76 {offsets = [0, 16], sizes = [16, 16], strides = [1, 1]} : vector<16x96xf32> to vector<16x16xf32>
    %99 = vector.shape_cast %98 : vector<16x16xf32> to vector<2x8x16xf32>
    %100 = vector.extract_strided_slice %76 {offsets = [0, 48], sizes = [16, 16], strides = [1, 1]} : vector<16x96xf32> to vector<16x16xf32>
    %101 = vector.shape_cast %100 : vector<16x16xf32> to vector<2x8x16xf32>
    %102 = vector.extract_strided_slice %76 {offsets = [0, 80], sizes = [16, 16], strides = [1, 1]} : vector<16x96xf32> to vector<16x16xf32>
    %103 = vector.shape_cast %102 : vector<16x16xf32> to vector<2x8x16xf32>
    "tpu.trace_start"() <{level = 10 : i32, message = "bqd,bkd->bqk"}> : () -> ()
    %cst_41 = arith.constant dense<0.000000e+00> : vector<2x8x8xf32>
    %104 = tpu.matmul %99, %101, %cst_41 {dimension_numbers = #tpu.dot_dimension_numbers<[2], [2], [1], [1], [0, 0, 0, 1, 1, 1], [0], [0]>} : vector<2x8x16xf32>, vector<2x8x16xf32>, vector<2x8x8xf32> -> vector<2x8x8xf32>
    "tpu.trace_stop"() : () -> ()
    %cst_42 = arith.constant 2.500000e-01 : f32
    %105 = vector.broadcast %cst_42 : f32 to vector<2x8x8xf32>
    %106 = arith.mulf %104, %105 : vector<2x8x8xf32>
    %cst_43 = arith.constant dense<0xFF800000> : vector<2x8xf32>
    %107 = vector.multi_reduction <maximumf>, %106, %cst_43 [2] : vector<2x8x8xf32> to vector<2x8xf32>
    %108 = vector.shape_cast %107 : vector<2x8xf32> to vector<2x8x1xf32>
    %109 = vector.broadcast %108 : vector<2x8x1xf32> to vector<2x8x8xf32>
    %110 = arith.subf %106, %109 : vector<2x8x8xf32>
    %111 = math.exp %110 : vector<2x8x8xf32>
    %cst_44 = arith.constant dense<0.000000e+00> : vector<2x8xf32>
    %112 = vector.multi_reduction <add>, %111, %cst_44 [2] : vector<2x8x8xf32> to vector<2x8xf32>
    %113 = vector.shape_cast %112 : vector<2x8xf32> to vector<2x8x1xf32>
    %114 = tpu.reciprocal %113 {approx = true} : vector<2x8x1xf32> -> vector<2x8x1xf32>
    %115 = vector.broadcast %114 : vector<2x8x1xf32> to vector<2x8x8xf32>
    %116 = arith.mulf %111, %115 : vector<2x8x8xf32>
    "tpu.trace_start"() <{level = 10 : i32, message = "bqk,bkd->bqd"}> : () -> ()
    %cst_45 = arith.constant dense<0.000000e+00> : vector<2x8x16xf32>
    %117 = tpu.matmul %116, %103, %cst_45 {dimension_numbers = #tpu.dot_dimension_numbers<[2], [1], [1], [2], [0, 0, 0, 1, 1, 2], [0], [0]>} : vector<2x8x8xf32>, vector<2x8x16xf32>, vector<2x8x16xf32> -> vector<2x8x16xf32>
    "tpu.trace_stop"() : () -> ()
    %118 = vector.shape_cast %117 : vector<2x8x16xf32> to vector<16x16xf32>
    %119 = tpu.concatenate %97, %118 in 1 : vector<16x16xf32>, vector<16x16xf32> -> vector<16x32xf32>
    %c0_46 = arith.constant 0 : index
    %c0_47 = arith.constant 0 : index
    %c0_48 = arith.constant 0 : index
    %c0_49 = arith.constant 0 : index
    %120 = vector.load %arg8[%c0_46, %c0_47, %c0_48, %c0_49] : memref<2x3x32x32xf32, #tpu.memory_space<vmem>>, vector<1x1x32x32xf32>
    %121 = vector.shape_cast %120 : vector<1x1x32x32xf32> to vector<32x32xf32>
    %cst_50 = arith.constant dense<0.000000e+00> : vector<16x32xf32>
    %122 = tpu.matmul %119, %121, %cst_50 {dimension_numbers = #tpu.dot_dimension_numbers<[1], [0], [0], [1], [0, 0, 1, 1], [], []>} : vector<16x32xf32>, vector<32x32xf32>, vector<16x32xf32> -> vector<16x32xf32>
    %123 = vector.extract_strided_slice %69 {offsets = [0, 0], sizes = [1, 32], strides = [1, 1]} : vector<7x32xf32> to vector<1x32xf32>
    %124 = vector.broadcast %123 : vector<1x32xf32> to vector<16x32xf32>
    %125 = arith.addf %122, %124 : vector<16x32xf32>
    %126 = arith.addf %67, %125 : vector<16x32xf32>
    %127 = vector.extract_strided_slice %69 {offsets = [3, 0], sizes = [1, 32], strides = [1, 1]} : vector<7x32xf32> to vector<1x32xf32>
    %128 = vector.extract_strided_slice %69 {offsets = [4, 0], sizes = [1, 32], strides = [1, 1]} : vector<7x32xf32> to vector<1x32xf32>
    %cst_51 = arith.constant dense<0.000000e+00> : vector<16xf32>
    %129 = vector.multi_reduction <add>, %126, %cst_51 [1] : vector<16x32xf32> to vector<16xf32>
    %130 = vector.shape_cast %129 : vector<16xf32> to vector<16x1xf32>
    %cst_52 = arith.constant 3.200000e+01 : f32
    %131 = vector.broadcast %cst_52 : f32 to vector<16x1xf32>
    %132 = arith.divf %130, %131 : vector<16x1xf32>
    %133 = vector.broadcast %132 : vector<16x1xf32> to vector<16x32xf32>
    %134 = arith.subf %126, %133 : vector<16x32xf32>
    %135 = arith.mulf %134, %134 : vector<16x32xf32>
    %cst_53 = arith.constant dense<0.000000e+00> : vector<16xf32>
    %136 = vector.multi_reduction <add>, %135, %cst_53 [1] : vector<16x32xf32> to vector<16xf32>
    %137 = vector.shape_cast %136 : vector<16xf32> to vector<16x1xf32>
    %cst_54 = arith.constant 3.200000e+01 : f32
    %138 = vector.broadcast %cst_54 : f32 to vector<16x1xf32>
    %139 = arith.divf %137, %138 : vector<16x1xf32>
    %140 = vector.broadcast %132 : vector<16x1xf32> to vector<16x32xf32>
    %141 = arith.subf %126, %140 : vector<16x32xf32>
    %cst_55 = arith.constant 9.99999974E-6 : f32
    %142 = vector.broadcast %cst_55 : f32 to vector<16x1xf32>
    %143 = arith.addf %139, %142 : vector<16x1xf32>
    %144 = math.rsqrt %143 : vector<16x1xf32>
    %145 = vector.broadcast %144 : vector<16x1xf32> to vector<16x32xf32>
    %146 = arith.mulf %141, %145 : vector<16x32xf32>
    %147 = vector.broadcast %127 : vector<1x32xf32> to vector<16x32xf32>
    %148 = arith.mulf %146, %147 : vector<16x32xf32>
    %149 = vector.broadcast %128 : vector<1x32xf32> to vector<16x32xf32>
    %150 = arith.addf %148, %149 : vector<16x32xf32>
    %c0_56 = arith.constant 0 : index
    %c1_57 = arith.constant 1 : index
    %c0_58 = arith.constant 0 : index
    %c0_59 = arith.constant 0 : index
    %151 = vector.load %arg8[%c0_56, %c1_57, %c0_58, %c0_59] : memref<2x3x32x32xf32, #tpu.memory_space<vmem>>, vector<1x1x32x32xf32>
    %152 = vector.shape_cast %151 : vector<1x1x32x32xf32> to vector<32x32xf32>
    %cst_60 = arith.constant dense<0.000000e+00> : vector<16x32xf32>
    %153 = tpu.matmul %150, %152, %cst_60 {dimension_numbers = #tpu.dot_dimension_numbers<[1], [0], [0], [1], [0, 0, 1, 1], [], []>} : vector<16x32xf32>, vector<32x32xf32>, vector<16x32xf32> -> vector<16x32xf32>
    %154 = vector.extract_strided_slice %69 {offsets = [1, 0], sizes = [1, 32], strides = [1, 1]} : vector<7x32xf32> to vector<1x32xf32>
    %155 = vector.broadcast %154 : vector<1x32xf32> to vector<16x32xf32>
    %156 = arith.addf %153, %155 : vector<16x32xf32>
    %cst_61 = arith.constant 5.000000e-01 : f32
    %157 = vector.broadcast %cst_61 : f32 to vector<16x32xf32>
    %158 = arith.mulf %157, %156 : vector<16x32xf32>
    %cst_62 = arith.constant 4.471500e-02 : f32
    %159 = vector.broadcast %cst_62 : f32 to vector<16x32xf32>
    %160 = arith.mulf %159, %156 : vector<16x32xf32>
    %161 = arith.mulf %160, %156 : vector<16x32xf32>
    %162 = arith.mulf %161, %156 : vector<16x32xf32>
    %163 = arith.addf %156, %162 : vector<16x32xf32>
    %cst_63 = arith.constant 0.797884583 : f32
    %164 = vector.broadcast %cst_63 : f32 to vector<16x32xf32>
    %165 = arith.mulf %164, %163 : vector<16x32xf32>
    %166 = math.tanh %165 : vector<16x32xf32>
    %cst_64 = arith.constant 1.000000e+00 : f32
    %167 = vector.broadcast %cst_64 : f32 to vector<16x32xf32>
    %168 = arith.addf %167, %166 : vector<16x32xf32>
    %169 = arith.mulf %158, %168 : vector<16x32xf32>
    %c0_65 = arith.constant 0 : index
    %c2_66 = arith.constant 2 : index
    %c0_67 = arith.constant 0 : index
    %c0_68 = arith.constant 0 : index
    %170 = vector.load %arg8[%c0_65, %c2_66, %c0_67, %c0_68] : memref<2x3x32x32xf32, #tpu.memory_space<vmem>>, vector<1x1x32x32xf32>
    %171 = vector.shape_cast %170 : vector<1x1x32x32xf32> to vector<32x32xf32>
    %cst_69 = arith.constant dense<0.000000e+00> : vector<16x32xf32>
    %172 = tpu.matmul %169, %171, %cst_69 {dimension_numbers = #tpu.dot_dimension_numbers<[1], [0], [0], [1], [0, 0, 1, 1], [], []>} : vector<16x32xf32>, vector<32x32xf32>, vector<16x32xf32> -> vector<16x32xf32>
    %173 = vector.extract_strided_slice %69 {offsets = [2, 0], sizes = [1, 32], strides = [1, 1]} : vector<7x32xf32> to vector<1x32xf32>
    %174 = vector.broadcast %173 : vector<1x32xf32> to vector<16x32xf32>
    %175 = arith.addf %172, %174 : vector<16x32xf32>
    %176 = arith.addf %150, %175 : vector<16x32xf32>
    %177 = vector.extract_strided_slice %69 {offsets = [5, 0], sizes = [1, 32], strides = [1, 1]} : vector<7x32xf32> to vector<1x32xf32>
    %178 = vector.extract_strided_slice %69 {offsets = [6, 0], sizes = [1, 32], strides = [1, 1]} : vector<7x32xf32> to vector<1x32xf32>
    %cst_70 = arith.constant dense<0.000000e+00> : vector<16xf32>
    %179 = vector.multi_reduction <add>, %176, %cst_70 [1] : vector<16x32xf32> to vector<16xf32>
    %180 = vector.shape_cast %179 : vector<16xf32> to vector<16x1xf32>
    %cst_71 = arith.constant 3.200000e+01 : f32
    %181 = vector.broadcast %cst_71 : f32 to vector<16x1xf32>
    %182 = arith.divf %180, %181 : vector<16x1xf32>
    %183 = vector.broadcast %182 : vector<16x1xf32> to vector<16x32xf32>
    %184 = arith.subf %176, %183 : vector<16x32xf32>
    %185 = arith.mulf %184, %184 : vector<16x32xf32>
    %cst_72 = arith.constant dense<0.000000e+00> : vector<16xf32>
    %186 = vector.multi_reduction <add>, %185, %cst_72 [1] : vector<16x32xf32> to vector<16xf32>
    %187 = vector.shape_cast %186 : vector<16xf32> to vector<16x1xf32>
    %cst_73 = arith.constant 3.200000e+01 : f32
    %188 = vector.broadcast %cst_73 : f32 to vector<16x1xf32>
    %189 = arith.divf %187, %188 : vector<16x1xf32>
    %190 = vector.broadcast %182 : vector<16x1xf32> to vector<16x32xf32>
    %191 = arith.subf %176, %190 : vector<16x32xf32>
    %cst_74 = arith.constant 9.99999974E-6 : f32
    %192 = vector.broadcast %cst_74 : f32 to vector<16x1xf32>
    %193 = arith.addf %189, %192 : vector<16x1xf32>
    %194 = math.rsqrt %193 : vector<16x1xf32>
    %195 = vector.broadcast %194 : vector<16x1xf32> to vector<16x32xf32>
    %196 = arith.mulf %191, %195 : vector<16x32xf32>
    %197 = vector.broadcast %177 : vector<1x32xf32> to vector<16x32xf32>
    %198 = arith.mulf %196, %197 : vector<16x32xf32>
    %199 = vector.broadcast %178 : vector<1x32xf32> to vector<16x32xf32>
    %200 = arith.addf %198, %199 : vector<16x32xf32>
    %c1_75 = arith.constant 1 : index
    %c0_76 = arith.constant 0 : index
    %c0_77 = arith.constant 0 : index
    %201 = vector.load %arg9[%c1_75, %c0_76, %c0_77] : memref<2x7x32xf32, #tpu.memory_space<vmem>>, vector<1x7x32xf32>
    %202 = vector.shape_cast %201 : vector<1x7x32xf32> to vector<7x32xf32>
    %c1_78 = arith.constant 1 : index
    %c0_79 = arith.constant 0 : index
    %c0_80 = arith.constant 0 : index
    %203 = vector.load %arg6[%c1_78, %c0_79, %c0_80] : memref<2x32x96xf32, #tpu.memory_space<vmem>>, vector<1x32x96xf32>
    %204 = vector.shape_cast %203 : vector<1x32x96xf32> to vector<32x96xf32>
    %cst_81 = arith.constant dense<0.000000e+00> : vector<16x96xf32>
    %205 = tpu.matmul %200, %204, %cst_81 {dimension_numbers = #tpu.dot_dimension_numbers<[1], [0], [0], [1], [0, 0, 1, 1], [], []>} : vector<16x32xf32>, vector<32x96xf32>, vector<16x96xf32> -> vector<16x96xf32>
    %c1_82 = arith.constant 1 : index
    %c0_83 = arith.constant 0 : index
    %c0_84 = arith.constant 0 : index
    %206 = vector.load %arg7[%c1_82, %c0_83, %c0_84] : memref<2x1x96xf32, #tpu.memory_space<vmem>>, vector<1x1x96xf32>
    %207 = vector.shape_cast %206 : vector<1x1x96xf32> to vector<1x96xf32>
    %208 = vector.broadcast %207 : vector<1x96xf32> to vector<16x96xf32>
    %209 = arith.addf %205, %208 : vector<16x96xf32>
    %210 = vector.extract_strided_slice %209 {offsets = [0, 0], sizes = [16, 16], strides = [1, 1]} : vector<16x96xf32> to vector<16x16xf32>
    %211 = vector.shape_cast %210 : vector<16x16xf32> to vector<2x8x16xf32>
    %212 = vector.extract_strided_slice %209 {offsets = [0, 32], sizes = [16, 16], strides = [1, 1]} : vector<16x96xf32> to vector<16x16xf32>
    %213 = vector.shape_cast %212 : vector<16x16xf32> to vector<2x8x16xf32>
    %214 = vector.extract_strided_slice %209 {offsets = [0, 64], sizes = [16, 16], strides = [1, 1]} : vector<16x96xf32> to vector<16x16xf32>
    %215 = vector.shape_cast %214 : vector<16x16xf32> to vector<2x8x16xf32>
    "tpu.trace_start"() <{level = 10 : i32, message = "bqd,bkd->bqk"}> : () -> ()
    %cst_85 = arith.constant dense<0.000000e+00> : vector<2x8x8xf32>
    %216 = tpu.matmul %211, %213, %cst_85 {dimension_numbers = #tpu.dot_dimension_numbers<[2], [2], [1], [1], [0, 0, 0, 1, 1, 1], [0], [0]>} : vector<2x8x16xf32>, vector<2x8x16xf32>, vector<2x8x8xf32> -> vector<2x8x8xf32>
    "tpu.trace_stop"() : () -> ()
    %cst_86 = arith.constant 2.500000e-01 : f32
    %217 = vector.broadcast %cst_86 : f32 to vector<2x8x8xf32>
    %218 = arith.mulf %216, %217 : vector<2x8x8xf32>
    %cst_87 = arith.constant dense<0xFF800000> : vector<2x8xf32>
    %219 = vector.multi_reduction <maximumf>, %218, %cst_87 [2] : vector<2x8x8xf32> to vector<2x8xf32>
    %220 = vector.shape_cast %219 : vector<2x8xf32> to vector<2x8x1xf32>
    %221 = vector.broadcast %220 : vector<2x8x1xf32> to vector<2x8x8xf32>
    %222 = arith.subf %218, %221 : vector<2x8x8xf32>
    %223 = math.exp %222 : vector<2x8x8xf32>
    %cst_88 = arith.constant dense<0.000000e+00> : vector<2x8xf32>
    %224 = vector.multi_reduction <add>, %223, %cst_88 [2] : vector<2x8x8xf32> to vector<2x8xf32>
    %225 = vector.shape_cast %224 : vector<2x8xf32> to vector<2x8x1xf32>
    %226 = tpu.reciprocal %225 {approx = true} : vector<2x8x1xf32> -> vector<2x8x1xf32>
    %227 = vector.broadcast %226 : vector<2x8x1xf32> to vector<2x8x8xf32>
    %228 = arith.mulf %223, %227 : vector<2x8x8xf32>
    "tpu.trace_start"() <{level = 10 : i32, message = "bqk,bkd->bqd"}> : () -> ()
    %cst_89 = arith.constant dense<0.000000e+00> : vector<2x8x16xf32>
    %229 = tpu.matmul %228, %215, %cst_89 {dimension_numbers = #tpu.dot_dimension_numbers<[2], [1], [1], [2], [0, 0, 0, 1, 1, 2], [0], [0]>} : vector<2x8x8xf32>, vector<2x8x16xf32>, vector<2x8x16xf32> -> vector<2x8x16xf32>
    "tpu.trace_stop"() : () -> ()
    %230 = vector.shape_cast %229 : vector<2x8x16xf32> to vector<16x16xf32>
    %231 = vector.extract_strided_slice %209 {offsets = [0, 16], sizes = [16, 16], strides = [1, 1]} : vector<16x96xf32> to vector<16x16xf32>
    %232 = vector.shape_cast %231 : vector<16x16xf32> to vector<2x8x16xf32>
    %233 = vector.extract_strided_slice %209 {offsets = [0, 48], sizes = [16, 16], strides = [1, 1]} : vector<16x96xf32> to vector<16x16xf32>
    %234 = vector.shape_cast %233 : vector<16x16xf32> to vector<2x8x16xf32>
    %235 = vector.extract_strided_slice %209 {offsets = [0, 80], sizes = [16, 16], strides = [1, 1]} : vector<16x96xf32> to vector<16x16xf32>
    %236 = vector.shape_cast %235 : vector<16x16xf32> to vector<2x8x16xf32>
    "tpu.trace_start"() <{level = 10 : i32, message = "bqd,bkd->bqk"}> : () -> ()
    %cst_90 = arith.constant dense<0.000000e+00> : vector<2x8x8xf32>
    %237 = tpu.matmul %232, %234, %cst_90 {dimension_numbers = #tpu.dot_dimension_numbers<[2], [2], [1], [1], [0, 0, 0, 1, 1, 1], [0], [0]>} : vector<2x8x16xf32>, vector<2x8x16xf32>, vector<2x8x8xf32> -> vector<2x8x8xf32>
    "tpu.trace_stop"() : () -> ()
    %cst_91 = arith.constant 2.500000e-01 : f32
    %238 = vector.broadcast %cst_91 : f32 to vector<2x8x8xf32>
    %239 = arith.mulf %237, %238 : vector<2x8x8xf32>
    %cst_92 = arith.constant dense<0xFF800000> : vector<2x8xf32>
    %240 = vector.multi_reduction <maximumf>, %239, %cst_92 [2] : vector<2x8x8xf32> to vector<2x8xf32>
    %241 = vector.shape_cast %240 : vector<2x8xf32> to vector<2x8x1xf32>
    %242 = vector.broadcast %241 : vector<2x8x1xf32> to vector<2x8x8xf32>
    %243 = arith.subf %239, %242 : vector<2x8x8xf32>
    %244 = math.exp %243 : vector<2x8x8xf32>
    %cst_93 = arith.constant dense<0.000000e+00> : vector<2x8xf32>
    %245 = vector.multi_reduction <add>, %244, %cst_93 [2] : vector<2x8x8xf32> to vector<2x8xf32>
    %246 = vector.shape_cast %245 : vector<2x8xf32> to vector<2x8x1xf32>
    %247 = tpu.reciprocal %246 {approx = true} : vector<2x8x1xf32> -> vector<2x8x1xf32>
    %248 = vector.broadcast %247 : vector<2x8x1xf32> to vector<2x8x8xf32>
    %249 = arith.mulf %244, %248 : vector<2x8x8xf32>
    "tpu.trace_start"() <{level = 10 : i32, message = "bqk,bkd->bqd"}> : () -> ()
    %cst_94 = arith.constant dense<0.000000e+00> : vector<2x8x16xf32>
    %250 = tpu.matmul %249, %236, %cst_94 {dimension_numbers = #tpu.dot_dimension_numbers<[2], [1], [1], [2], [0, 0, 0, 1, 1, 2], [0], [0]>} : vector<2x8x8xf32>, vector<2x8x16xf32>, vector<2x8x16xf32> -> vector<2x8x16xf32>
    "tpu.trace_stop"() : () -> ()
    %251 = vector.shape_cast %250 : vector<2x8x16xf32> to vector<16x16xf32>
    %252 = tpu.concatenate %230, %251 in 1 : vector<16x16xf32>, vector<16x16xf32> -> vector<16x32xf32>
    %c1_95 = arith.constant 1 : index
    %c0_96 = arith.constant 0 : index
    %c0_97 = arith.constant 0 : index
    %c0_98 = arith.constant 0 : index
    %253 = vector.load %arg8[%c1_95, %c0_96, %c0_97, %c0_98] : memref<2x3x32x32xf32, #tpu.memory_space<vmem>>, vector<1x1x32x32xf32>
    %254 = vector.shape_cast %253 : vector<1x1x32x32xf32> to vector<32x32xf32>
    %cst_99 = arith.constant dense<0.000000e+00> : vector<16x32xf32>
    %255 = tpu.matmul %252, %254, %cst_99 {dimension_numbers = #tpu.dot_dimension_numbers<[1], [0], [0], [1], [0, 0, 1, 1], [], []>} : vector<16x32xf32>, vector<32x32xf32>, vector<16x32xf32> -> vector<16x32xf32>
    %256 = vector.extract_strided_slice %202 {offsets = [0, 0], sizes = [1, 32], strides = [1, 1]} : vector<7x32xf32> to vector<1x32xf32>
    %257 = vector.broadcast %256 : vector<1x32xf32> to vector<16x32xf32>
    %258 = arith.addf %255, %257 : vector<16x32xf32>
    %259 = arith.addf %200, %258 : vector<16x32xf32>
    %260 = vector.extract_strided_slice %202 {offsets = [3, 0], sizes = [1, 32], strides = [1, 1]} : vector<7x32xf32> to vector<1x32xf32>
    %261 = vector.extract_strided_slice %202 {offsets = [4, 0], sizes = [1, 32], strides = [1, 1]} : vector<7x32xf32> to vector<1x32xf32>
    %cst_100 = arith.constant dense<0.000000e+00> : vector<16xf32>
    %262 = vector.multi_reduction <add>, %259, %cst_100 [1] : vector<16x32xf32> to vector<16xf32>
    %263 = vector.shape_cast %262 : vector<16xf32> to vector<16x1xf32>
    %cst_101 = arith.constant 3.200000e+01 : f32
    %264 = vector.broadcast %cst_101 : f32 to vector<16x1xf32>
    %265 = arith.divf %263, %264 : vector<16x1xf32>
    %266 = vector.broadcast %265 : vector<16x1xf32> to vector<16x32xf32>
    %267 = arith.subf %259, %266 : vector<16x32xf32>
    %268 = arith.mulf %267, %267 : vector<16x32xf32>
    %cst_102 = arith.constant dense<0.000000e+00> : vector<16xf32>
    %269 = vector.multi_reduction <add>, %268, %cst_102 [1] : vector<16x32xf32> to vector<16xf32>
    %270 = vector.shape_cast %269 : vector<16xf32> to vector<16x1xf32>
    %cst_103 = arith.constant 3.200000e+01 : f32
    %271 = vector.broadcast %cst_103 : f32 to vector<16x1xf32>
    %272 = arith.divf %270, %271 : vector<16x1xf32>
    %273 = vector.broadcast %265 : vector<16x1xf32> to vector<16x32xf32>
    %274 = arith.subf %259, %273 : vector<16x32xf32>
    %cst_104 = arith.constant 9.99999974E-6 : f32
    %275 = vector.broadcast %cst_104 : f32 to vector<16x1xf32>
    %276 = arith.addf %272, %275 : vector<16x1xf32>
    %277 = math.rsqrt %276 : vector<16x1xf32>
    %278 = vector.broadcast %277 : vector<16x1xf32> to vector<16x32xf32>
    %279 = arith.mulf %274, %278 : vector<16x32xf32>
    %280 = vector.broadcast %260 : vector<1x32xf32> to vector<16x32xf32>
    %281 = arith.mulf %279, %280 : vector<16x32xf32>
    %282 = vector.broadcast %261 : vector<1x32xf32> to vector<16x32xf32>
    %283 = arith.addf %281, %282 : vector<16x32xf32>
    %c1_105 = arith.constant 1 : index
    %c1_106 = arith.constant 1 : index
    %c0_107 = arith.constant 0 : index
    %c0_108 = arith.constant 0 : index
    %284 = vector.load %arg8[%c1_105, %c1_106, %c0_107, %c0_108] : memref<2x3x32x32xf32, #tpu.memory_space<vmem>>, vector<1x1x32x32xf32>
    %285 = vector.shape_cast %284 : vector<1x1x32x32xf32> to vector<32x32xf32>
    %cst_109 = arith.constant dense<0.000000e+00> : vector<16x32xf32>
    %286 = tpu.matmul %283, %285, %cst_109 {dimension_numbers = #tpu.dot_dimension_numbers<[1], [0], [0], [1], [0, 0, 1, 1], [], []>} : vector<16x32xf32>, vector<32x32xf32>, vector<16x32xf32> -> vector<16x32xf32>
    %287 = vector.extract_strided_slice %202 {offsets = [1, 0], sizes = [1, 32], strides = [1, 1]} : vector<7x32xf32> to vector<1x32xf32>
    %288 = vector.broadcast %287 : vector<1x32xf32> to vector<16x32xf32>
    %289 = arith.addf %286, %288 : vector<16x32xf32>
    %cst_110 = arith.constant 5.000000e-01 : f32
    %290 = vector.broadcast %cst_110 : f32 to vector<16x32xf32>
    %291 = arith.mulf %290, %289 : vector<16x32xf32>
    %cst_111 = arith.constant 4.471500e-02 : f32
    %292 = vector.broadcast %cst_111 : f32 to vector<16x32xf32>
    %293 = arith.mulf %292, %289 : vector<16x32xf32>
    %294 = arith.mulf %293, %289 : vector<16x32xf32>
    %295 = arith.mulf %294, %289 : vector<16x32xf32>
    %296 = arith.addf %289, %295 : vector<16x32xf32>
    %cst_112 = arith.constant 0.797884583 : f32
    %297 = vector.broadcast %cst_112 : f32 to vector<16x32xf32>
    %298 = arith.mulf %297, %296 : vector<16x32xf32>
    %299 = math.tanh %298 : vector<16x32xf32>
    %cst_113 = arith.constant 1.000000e+00 : f32
    %300 = vector.broadcast %cst_113 : f32 to vector<16x32xf32>
    %301 = arith.addf %300, %299 : vector<16x32xf32>
    %302 = arith.mulf %291, %301 : vector<16x32xf32>
    %c1_114 = arith.constant 1 : index
    %c2_115 = arith.constant 2 : index
    %c0_116 = arith.constant 0 : index
    %c0_117 = arith.constant 0 : index
    %303 = vector.load %arg8[%c1_114, %c2_115, %c0_116, %c0_117] : memref<2x3x32x32xf32, #tpu.memory_space<vmem>>, vector<1x1x32x32xf32>
    %304 = vector.shape_cast %303 : vector<1x1x32x32xf32> to vector<32x32xf32>
    %cst_118 = arith.constant dense<0.000000e+00> : vector<16x32xf32>
    %305 = tpu.matmul %302, %304, %cst_118 {dimension_numbers = #tpu.dot_dimension_numbers<[1], [0], [0], [1], [0, 0, 1, 1], [], []>} : vector<16x32xf32>, vector<32x32xf32>, vector<16x32xf32> -> vector<16x32xf32>
    %306 = vector.extract_strided_slice %202 {offsets = [2, 0], sizes = [1, 32], strides = [1, 1]} : vector<7x32xf32> to vector<1x32xf32>
    %307 = vector.broadcast %306 : vector<1x32xf32> to vector<16x32xf32>
    %308 = arith.addf %305, %307 : vector<16x32xf32>
    %309 = arith.addf %283, %308 : vector<16x32xf32>
    %310 = vector.extract_strided_slice %202 {offsets = [5, 0], sizes = [1, 32], strides = [1, 1]} : vector<7x32xf32> to vector<1x32xf32>
    %311 = vector.extract_strided_slice %202 {offsets = [6, 0], sizes = [1, 32], strides = [1, 1]} : vector<7x32xf32> to vector<1x32xf32>
    %cst_119 = arith.constant dense<0.000000e+00> : vector<16xf32>
    %312 = vector.multi_reduction <add>, %309, %cst_119 [1] : vector<16x32xf32> to vector<16xf32>
    %313 = vector.shape_cast %312 : vector<16xf32> to vector<16x1xf32>
    %cst_120 = arith.constant 3.200000e+01 : f32
    %314 = vector.broadcast %cst_120 : f32 to vector<16x1xf32>
    %315 = arith.divf %313, %314 : vector<16x1xf32>
    %316 = vector.broadcast %315 : vector<16x1xf32> to vector<16x32xf32>
    %317 = arith.subf %309, %316 : vector<16x32xf32>
    %318 = arith.mulf %317, %317 : vector<16x32xf32>
    %cst_121 = arith.constant dense<0.000000e+00> : vector<16xf32>
    %319 = vector.multi_reduction <add>, %318, %cst_121 [1] : vector<16x32xf32> to vector<16xf32>
    %320 = vector.shape_cast %319 : vector<16xf32> to vector<16x1xf32>
    %cst_122 = arith.constant 3.200000e+01 : f32
    %321 = vector.broadcast %cst_122 : f32 to vector<16x1xf32>
    %322 = arith.divf %320, %321 : vector<16x1xf32>
    %323 = vector.broadcast %315 : vector<16x1xf32> to vector<16x32xf32>
    %324 = arith.subf %309, %323 : vector<16x32xf32>
    %cst_123 = arith.constant 9.99999974E-6 : f32
    %325 = vector.broadcast %cst_123 : f32 to vector<16x1xf32>
    %326 = arith.addf %322, %325 : vector<16x1xf32>
    %327 = math.rsqrt %326 : vector<16x1xf32>
    %328 = vector.broadcast %327 : vector<16x1xf32> to vector<16x32xf32>
    %329 = arith.mulf %324, %328 : vector<16x32xf32>
    %330 = vector.broadcast %310 : vector<1x32xf32> to vector<16x32xf32>
    %331 = arith.mulf %329, %330 : vector<16x32xf32>
    %332 = vector.broadcast %311 : vector<1x32xf32> to vector<16x32xf32>
    %333 = arith.addf %331, %332 : vector<16x32xf32>
    %334 = vector.shape_cast %333 : vector<16x32xf32> to vector<2x8x32xf32>
    %c0_124 = arith.constant 0 : index
    %c0_125 = arith.constant 0 : index
    %c0_126 = arith.constant 0 : index
    %335 = vector.load %arg11[%c0_124, %c0_125, %c0_126] : memref<2x8x32xf32, #tpu.memory_space<vmem>>, vector<2x8x32xf32>
    tpu.vector_store %arg11[%c0_124, %c0_125, %c0_126], %334 {strides = array<i32>} : memref<2x8x32xf32, #tpu.memory_space<vmem>>, vector<2x8x32xf32>,
    %c0_127 = arith.constant 0 : index
    %c0_128 = arith.constant 0 : index
    %336 = vector.load %arg5[%c0_127, %c0_128] : memref<32x32xf32, #tpu.memory_space<vmem>>, vector<32x32xf32>
    %cst_129 = arith.constant dense<0.000000e+00> : vector<16x32xf32>
    %337 = tpu.matmul %333, %336, %cst_129 {dimension_numbers = #tpu.dot_dimension_numbers<[1], [0], [0], [1], [0, 0, 1, 1], [], []>} : vector<16x32xf32>, vector<32x32xf32>, vector<16x32xf32> -> vector<16x32xf32>
    %c3 = arith.constant 3 : index
    %c0_130 = arith.constant 0 : index
    %338 = vector.load %arg4[%c3, %c0_130] : memref<8x32xf32, #tpu.memory_space<vmem>>, vector<1x32xf32>
    %339 = vector.broadcast %338 : vector<1x32xf32> to vector<16x32xf32>
    %340 = arith.addf %337, %339 : vector<16x32xf32>
    %cst_131 = arith.constant 5.000000e-01 : f32
    %341 = vector.broadcast %cst_131 : f32 to vector<16x32xf32>
    %342 = arith.mulf %341, %340 : vector<16x32xf32>
    %cst_132 = arith.constant 4.471500e-02 : f32
    %343 = vector.broadcast %cst_132 : f32 to vector<16x32xf32>
    %344 = arith.mulf %343, %340 : vector<16x32xf32>
    %345 = arith.mulf %344, %340 : vector<16x32xf32>
    %346 = arith.mulf %345, %340 : vector<16x32xf32>
    %347 = arith.addf %340, %346 : vector<16x32xf32>
    %cst_133 = arith.constant 0.797884583 : f32
    %348 = vector.broadcast %cst_133 : f32 to vector<16x32xf32>
    %349 = arith.mulf %348, %347 : vector<16x32xf32>
    %350 = math.tanh %349 : vector<16x32xf32>
    %cst_134 = arith.constant 1.000000e+00 : f32
    %351 = vector.broadcast %cst_134 : f32 to vector<16x32xf32>
    %352 = arith.addf %351, %350 : vector<16x32xf32>
    %353 = arith.mulf %342, %352 : vector<16x32xf32>
    %c4 = arith.constant 4 : index
    %c0_135 = arith.constant 0 : index
    %354 = vector.load %arg4[%c4, %c0_135] : memref<8x32xf32, #tpu.memory_space<vmem>>, vector<1x32xf32>
    %c5 = arith.constant 5 : index
    %c0_136 = arith.constant 0 : index
    %355 = vector.load %arg4[%c5, %c0_136] : memref<8x32xf32, #tpu.memory_space<vmem>>, vector<1x32xf32>
    %cst_137 = arith.constant dense<0.000000e+00> : vector<16xf32>
    %356 = vector.multi_reduction <add>, %353, %cst_137 [1] : vector<16x32xf32> to vector<16xf32>
    %357 = vector.shape_cast %356 : vector<16xf32> to vector<16x1xf32>
    %cst_138 = arith.constant 3.200000e+01 : f32
    %358 = vector.broadcast %cst_138 : f32 to vector<16x1xf32>
    %359 = arith.divf %357, %358 : vector<16x1xf32>
    %360 = vector.broadcast %359 : vector<16x1xf32> to vector<16x32xf32>
    %361 = arith.subf %353, %360 : vector<16x32xf32>
    %362 = arith.mulf %361, %361 : vector<16x32xf32>
    %cst_139 = arith.constant dense<0.000000e+00> : vector<16xf32>
    %363 = vector.multi_reduction <add>, %362, %cst_139 [1] : vector<16x32xf32> to vector<16xf32>
    %364 = vector.shape_cast %363 : vector<16xf32> to vector<16x1xf32>
    %cst_140 = arith.constant 3.200000e+01 : f32
    %365 = vector.broadcast %cst_140 : f32 to vector<16x1xf32>
    %366 = arith.divf %364, %365 : vector<16x1xf32>
    %367 = vector.broadcast %359 : vector<16x1xf32> to vector<16x32xf32>
    %368 = arith.subf %353, %367 : vector<16x32xf32>
    %cst_141 = arith.constant 9.99999974E-6 : f32
    %369 = vector.broadcast %cst_141 : f32 to vector<16x1xf32>
    %370 = arith.addf %366, %369 : vector<16x1xf32>
    %371 = math.rsqrt %370 : vector<16x1xf32>
    %372 = vector.broadcast %371 : vector<16x1xf32> to vector<16x32xf32>
    %373 = arith.mulf %368, %372 : vector<16x32xf32>
    %374 = vector.broadcast %354 : vector<1x32xf32> to vector<16x32xf32>
    %375 = arith.mulf %373, %374 : vector<16x32xf32>
    %376 = vector.broadcast %355 : vector<1x32xf32> to vector<16x32xf32>
    %377 = arith.addf %375, %376 : vector<16x32xf32>
    %378 = vector.shape_cast %377 : vector<16x32xf32> to vector<2x8x32xf32>
    %c6 = arith.constant 6 : index
    %c0_142 = arith.constant 0 : index
    %379 = vector.load %arg4[%c6, %c0_142] : memref<8x32xf32, #tpu.memory_space<vmem>>, vector<1x32xf32>
    %380 = vector.shape_cast %379 : vector<1x32xf32> to vector<1x1x32xf32>
    %381 = vector.broadcast %380 : vector<1x1x32xf32> to vector<2x8x32xf32>
    %382 = arith.mulf %378, %381 : vector<2x8x32xf32>
    %cst_143 = arith.constant dense<0.000000e+00> : vector<2x8xf32>
    %383 = vector.multi_reduction <add>, %382, %cst_143 [2] : vector<2x8x32xf32> to vector<2x8xf32>
    %c7 = arith.constant 7 : index
    %c0_144 = arith.constant 0 : index
    %384 = vector.load %arg4[%c7, %c0_144] : memref<8x32xf32, #tpu.memory_space<vmem>>, vector<1x1xf32>
    %385 = vector.broadcast %384 : vector<1x1xf32> to vector<2x8xf32>
    %386 = arith.addf %383, %385 : vector<2x8xf32>
    %c0_145 = arith.constant 0 : index
    %c0_146 = arith.constant 0 : index
    %387 = vector.load %arg10[%c0_145, %c0_146] : memref<2x8xf32, #tpu.memory_space<vmem>>, vector<2x8xf32>
    tpu.vector_store %arg10[%c0_145, %c0_146], %386 {strides = array<i32>} : memref<2x8xf32, #tpu.memory_space<vmem>>, vector<2x8xf32>,
    return
  }
  func.func @transform_0(%arg0: i32) -> (i32, i32, i32) {
    %c0_i32 = arith.constant 0 : i32
    %c0_i32_0 = arith.constant 0 : i32
    %c0_i32_1 = arith.constant 0 : i32
    return %arg0, %c0_i32, %c0_i32_0 : i32, i32, i32
  }
  func.func @transform_1(%arg0: i32) -> (i32, i32) {
    %c0_i32 = arith.constant 0 : i32
    %c0_i32_0 = arith.constant 0 : i32
    %c0_i32_1 = arith.constant 0 : i32
    return %c0_i32, %c0_i32_0 : i32, i32
  }
  func.func @transform_2(%arg0: i32) -> (i32, i32) {
    %c0_i32 = arith.constant 0 : i32
    %c0_i32_0 = arith.constant 0 : i32
    %c0_i32_1 = arith.constant 0 : i32
    return %c0_i32, %c0_i32_0 : i32, i32
  }
  func.func @transform_3(%arg0: i32) -> (i32, i32) {
    %c0_i32 = arith.constant 0 : i32
    %c0_i32_0 = arith.constant 0 : i32
    %c0_i32_1 = arith.constant 0 : i32
    return %c0_i32, %c0_i32_0 : i32, i32
  }
  func.func @transform_4(%arg0: i32) -> (i32, i32) {
    %c0_i32 = arith.constant 0 : i32
    %c0_i32_0 = arith.constant 0 : i32
    %c0_i32_1 = arith.constant 0 : i32
    return %c0_i32, %c0_i32_0 : i32, i32
  }
  func.func @transform_5(%arg0: i32) -> (i32, i32, i32) {
    %c0_i32 = arith.constant 0 : i32
    %c0_i32_0 = arith.constant 0 : i32
    %c0_i32_1 = arith.constant 0 : i32
    %c0_i32_2 = arith.constant 0 : i32
    return %c0_i32, %c0_i32_0, %c0_i32_1 : i32, i32, i32
  }
  func.func @transform_6(%arg0: i32) -> (i32, i32, i32) {
    %c0_i32 = arith.constant 0 : i32
    %c0_i32_0 = arith.constant 0 : i32
    %c0_i32_1 = arith.constant 0 : i32
    %c0_i32_2 = arith.constant 0 : i32
    return %c0_i32, %c0_i32_0, %c0_i32_1 : i32, i32, i32
  }
  func.func @transform_7(%arg0: i32) -> (i32, i32, i32, i32) {
    %c0_i32 = arith.constant 0 : i32
    %c0_i32_0 = arith.constant 0 : i32
    %c0_i32_1 = arith.constant 0 : i32
    %c0_i32_2 = arith.constant 0 : i32
    %c0_i32_3 = arith.constant 0 : i32
    return %c0_i32, %c0_i32_0, %c0_i32_1, %c0_i32_2 : i32, i32, i32, i32
  }
  func.func @transform_8(%arg0: i32) -> (i32, i32, i32) {
    %c0_i32 = arith.constant 0 : i32
    %c0_i32_0 = arith.constant 0 : i32
    %c0_i32_1 = arith.constant 0 : i32
    %c0_i32_2 = arith.constant 0 : i32
    return %c0_i32, %c0_i32_0, %c0_i32_1 : i32, i32, i32
  }
  func.func @transform_9(%arg0: i32) -> (i32, i32) {
    %c0_i32 = arith.constant 0 : i32
    %c0_i32_0 = arith.constant 0 : i32
    return %arg0, %c0_i32 : i32, i32
  }
  func.func @transform_10(%arg0: i32) -> (i32, i32, i32) {
    %c0_i32 = arith.constant 0 : i32
    %c0_i32_0 = arith.constant 0 : i32
    %c0_i32_1 = arith.constant 0 : i32
    return %arg0, %c0_i32, %c0_i32_0 : i32, i32, i32
  }
}

</mosaic_0001>

<bundles_post_ra>
// kernel: encoder_forward.1
= control target key start
LH: loop header
LB: loop body
LE: loop exit
PB: predicated region body
PF: predicated region fallthrough
CT: control target
= control target key end

     0   :  { %16 = vsyncpa [#allocation3], 0  ;;  %vm40_vm0 = vcmask 130048   ;;  %s3821_s0 = inlined_call_operand.vmem [shape: f32[2,8,16], index: 0, kind: input, shape index: {}]   ;;  %s3822_s1 = inlined_call_operand.vmem [shape: f32[2,16], index: 1, kind: input, shape index: {}]   ;;  %s3823_s2 = inlined_call_operand.vmem [shape: f32[16,32], index: 2, kind: input, shape index: {}]   ;;  %s3824_s3 = inlined_call_operand.vmem [shape: f32[8,32], index: 3, kind: input, shape index: {}]   ;;  %s3825_s4 = inlined_call_operand.vmem [shape: f32[32,32], index: 4, kind: input, shape index: {}]   ;;  %s3826_s5 = inlined_call_operand.vmem [shape: f32[2,32,96], index: 5, kind: input, shape index: {}]   ;;  %s3827_s6 = inlined_call_operand.vmem [shape: f32[2,1,96], index: 6, kind: input, shape index: {}]   ;;  %s3828_s7 = inlined_call_operand.vmem [shape: f32[2,3,32,32], index: 7, kind: input, shape index: {}]   ;;  %s3829_s8 = inlined_call_operand.vmem [shape: f32[2,7,32], index: 8, kind: input, shape index: {}]   ;;  %s3830_s9 = inlined_call_operand.hbm [shape: f32[2,8], index: 9, kind: output, shape index: {0}]   ;;  %s3831_s10 = inlined_call_operand.hbm [shape: f32[2,8,32], index: 10, kind: output, shape index: {1}]  }
   0x1   :  { %v36_v0 = vld [vmem:[%s3821_s0] sm:$0xff]  ;;  %v37_v1 = vld [vmem:[%s3821_s0 + $0x8] sm:$0xff] }
   0x2   :  { %17 = vsyncpa [#allocation5], 0  ;;  %v41_v2 = vsel %vm40_vm0, %v36_v0, 0.0  ;;  %v44_v3 = vsel %vm40_vm0, %v37_v1, 0.0  ;;  %v80_v14 = vld [vmem:[%s3823_s2] sm:$0xff]  ;;  %v81_v15 = vld [vmem:[%s3823_s2 + $0x8] sm:$0xff] }
   0x3   :  { %42 = vadd.xlane.f32.xlu0 %v41_v2  ;;  %v3071_v16 = vpack.c.bf16 %v81_v15, %v80_v14  ;;  %v2714_v24 = vld [vmem:[%s3822_s1] ss:$0 sm:$0xff]  ;;  %v2715_v26 = vld [vmem:[%s3822_s1 + $0x1] ss:$0 sm:$0xff]  ;;  %vm188_vm1 = vcmask 261120   ;;  %vm3286_vm2 = vmmov 0  }
   0x4   :  { %v2716_v33 = vld [vmem:[%s3824_s3] ss:$0 sm:$0xff]  ;;  %s3287_s17 = smov 96   ;;  %vm477_vm3 = vcmask 64512   ;;  %s3288_s18 = smov 64  }
   0x5   :  { %3072 = vmatprep.subr.bf16.mxu0 %v3071_v16  ;;  %s3289_s19 = smov 80   ;;  %s3290_s20 = smov 112  }
   0x6   :  { %3074 = vmatpush3.bf16.msra.mxu0 %v3071_v16  ;;  %s3291_s21 = smov 48   ;;  %s3292_s28 = smov 16  }
   0x7   :  { %45 = vadd.xlane.f32.xlu0 %v44_v3  ;;  %s3293_s30 = smov [#allocation4]  }
   0x8   :  { %s2699_s11 = sshll.u32 %s3293_s30, 4  ;;  %s2700_s11 = int_to_ptr.vmem [resolvable:$true] %s2699_s11 }
   0x9   :  { %s3237_s12 = scalar_lea.vmem %s2700_s11, 256  ;;  %p3242_p1 = scmp.lt.s32.totalorder %s2700_s11, %s2700_s11 }
   0xa   :  { %p3238_p0 = scmp.ne.s32.totalorder %s2700_s11, %s3237_s12  ;;  %p3243_p2 = scmp.lt.s32.totalorder %s3237_s12, %s3237_s12 }
   0xc   :  { %p3244_p3 = por %p3243_p2, %p3242_p1 }
   0xe   :  { %p3245_p4 = pnand %p3244_p3, %p3238_p0 }
  0x90   :  { %v43_v4 = vpop.xlane.xlu0 %42 }
  0x91   :  { %v48_v5 = vmul.f32 0.0625, %v43_v4  ;;  %v229_v4 = vld [vmem:[%s3826_s5] sm:$0xff] }
  0x93   :  { %v50_v6 = vsub.f32 %v36_v0, %v48_v5  ;;  %v230_v5 = vld [vmem:[%s3826_s5 + $0x8] sm:$0xff] }
  0x94   :  { %v46_v7 = vpop.xlane.xlu0 %45 }
  0x95   :  { %v49_v8 = vmul.f32 0.0625, %v46_v7  ;;  %v52_v9 = vmul.f32 %v50_v6, %v50_v6  ;;  %v3075_v7 = vpack.c.bf16 %v230_v5, %v229_v4 }
  0x97   :  { %v51_v10 = vsub.f32 %v37_v1, %v49_v8  ;;  %v54_v11 = vsel %vm40_vm0, %v52_v9, 0.0  ;;  %v232_v8 = vld [vmem:[%s3826_s5 + $0x18] sm:$0xff]  ;;  %3076 = vmatprep.subr.bf16.mxu1 %v3075_v7 }
  0x98   :  { %55 = vadd.xlane.f32.xlu1 %v54_v11  ;;  %3078 = vmatpush3.bf16.msra.mxu1 %v3075_v7 }
  0x99   :  { %v53_v12 = vmul.f32 %v51_v10, %v51_v10 }
  0x9b   :  { %v57_v13 = vsel %vm40_vm0, %v53_v12, 0.0 }
  0x9c   :  { %58 = vadd.xlane.f32.xlu1 %v57_v13 }
 0x125   :  { %v56_v17 = vpop.xlane.xlu1 %55 }
 0x126   :  { %v60_v18 = vmul.f32 0.0625, %v56_v17  ;;  %v2719_v17 = vld [vmem:[%s3824_s3 + $0x1] ss:$0 sm:$0xff] }
 0x128   :  { %v62_v19 = vadd.f32 1e-05, %v60_v18 }
 0x129   :  { %v59_v20 = vpop.xlane.xlu1 %58 }
 0x12a   :  { %3161 = vrsqrt.f32 %v62_v19  ;;  %v61_v21 = vmul.f32 0.0625, %v59_v20 }
 0x12c   :  { %v63_v22 = vadd.f32 1e-05, %v61_v21  ;;  %v2720_v21 = vld [vmem:[%s3824_s3 + $0x2] ss:$0 sm:$0xff] }
 0x12e   :  { %3163 = vrsqrt.f32 %v63_v22 }
 0x134   :  { %v3162_v23 = vpop.eup %3161 }
 0x135   :  { %v66_v25 = vmul.f32 %v3162_v23, %v50_v6  ;;  %v231_v6 = vld [vmem:[%s3826_s5 + $0x10] sm:$0xff] }
 0x136   :  { %v3079_v9 = vpack.c.bf16 %v232_v8, %v231_v6 }
 0x137   :  { %v72_v27 = vmul.f32 %v2714_v24, %v66_v25 }
 0x138   :  { %v3164_v28 = vpop.eup %3163  ;;  %3080 = vmatprep.subr.bf16.mxu1 %v3079_v9 }
 0x139   :  { %v67_v29 = vmul.f32 %v3164_v28, %v51_v10  ;;  %v78_v30 = vadd.f32 %v2715_v26, %v72_v27  ;;  %3082 = vmatpush3.bf16.msra.mxu1 %v3079_v9  ;;  %v2721_v27 = vld [vmem:[%s3827_s6] ss:$0 sm:$0xff] }
 0x13b   :  { %v73_v31 = vmul.f32 %v2714_v24, %v67_v29  ;;  %2889 = vmatprep.mubr.msk.f32.mxu0 %vm40_vm0, %v78_v30 }
 0x13d   :  { %v79_v32 = vadd.f32 %v2715_v26, %v73_v31  ;;  %v3285_v26 = vmov 0.0  }
 0x13e   :  { %2903 = vmatprep.subr.mxu0 %v3285_v26  ;;  %2913 = vmatprep.subr.mxu1 %v3285_v26 }
 0x13f   :  { %2890 = vmatmul.mubr.msk.f32.vlgmr.msra.gmra.mrb[0].mxu0 %vm40_vm0, %v79_v32 }
 0x140   :  { %2905 = vmatprep.mubr.msk.f32.mxu0 %vm3286_vm2, %v3285_v26 }
 0x212   :  { %v2891_v34 = vpop.f32.mrb[0].mxu0 }
 0x213   :  { %v165_v35 = vadd.f32 %v2891_v34, %v2716_v33  ;;  %v159_v36 = vpop.f32.mrb[1].mxu0 }
 0x214   :  { %v160_v37 = vadd.f32 %v2716_v33, %v159_v36 }
 0x215   :  { %v171_v38 = vmul.f32 0.044715, %v165_v35  ;;  %v169_v50 = vmul.f32 0.5, %v165_v35 }
 0x216   :  { %v170_v39 = vmul.f32 0.044715, %v160_v37  ;;  %v168_v52 = vmul.f32 0.5, %v160_v37 }
 0x217   :  { %v173_v40 = vmul.f32 %v171_v38, %v165_v35 }
 0x218   :  { %v172_v41 = vmul.f32 %v170_v39, %v160_v37 }
 0x219   :  { %v175_v42 = vmul.f32 %v173_v40, %v165_v35 }
 0x21a   :  { %v174_v43 = vmul.f32 %v172_v41, %v160_v37 }
 0x21b   :  { %v177_v44 = vadd.f32 %v175_v42, %v165_v35 }
 0x21c   :  { %v176_v45 = vadd.f32 %v174_v43, %v160_v37 }
 0x21d   :  { %v179_v46 = vmul.f32 0.7978846, %v177_v44 }
 0x21e   :  { %v178_v47 = vmul.f32 0.7978846, %v176_v45 }
 0x21f   :  { %3165 = vtanh.f32 %v179_v46 }
 0x220   :  { %3167 = vtanh.f32 %v178_v47 }
 0x229   :  { %v3166_v48 = vpop.eup %3165 }
 0x22a   :  { %v3168_v49 = vpop.eup %3167  ;;  %v183_v51 = vadd.f32 1.0, %v3166_v48 }
 0x22b   :  { %v182_v53 = vadd.f32 1.0, %v3168_v49 }
 0x22c   :  { %v185_v54 = vmul.f32 %v183_v51, %v169_v50 }
 0x22d   :  { %v184_v55 = vmul.f32 %v182_v53, %v168_v52 }
 0x22e   :  { %v192_v56 = vsel %vm188_vm1, %v185_v54, 0.0 }
 0x22f   :  { %193 = vadd.xlane.f32.xlu1 %v192_v56  ;;  %v189_v57 = vsel %vm188_vm1, %v184_v55, 0.0 }
 0x230   :  { %190 = vadd.xlane.f32.xlu0 %v189_v57 }
 0x2bc   :  { %v194_v58 = vpop.xlane.xlu1 %193 }
 0x2bd   :  { %v197_v59 = vmul.f32 0.03125, %v194_v58  ;;  %v191_v60 = vpop.xlane.xlu0 %190 }
 0x2be   :  { %v196_v61 = vmul.f32 0.03125, %v191_v60 }
 0x2bf   :  { %v199_v62 = vsub.f32 %v185_v54, %v197_v59 }
 0x2c0   :  { %v198_v63 = vsub.f32 %v184_v55, %v196_v61 }
 0x2c1   :  { %v201_v0 = vmul.f32 %v199_v62, %v199_v62 }
 0x2c2   :  { %v200_v1 = vmul.f32 %v198_v63, %v198_v63 }
 0x2c3   :  { %v205_v2 = vsel %vm188_vm1, %v201_v0, 0.0 }
 0x2c4   :  { %206 = vadd.xlane.f32.xlu1 %v205_v2  ;;  %v202_v3 = vsel %vm188_vm1, %v200_v1, 0.0 }
 0x2c5   :  { %203 = vadd.xlane.f32.xlu0 %v202_v3 }
 0x351   :  { %v207_v10 = vpop.xlane.xlu1 %206 }
 0x352   :  { %v209_v11 = vmul.f32 0.03125, %v207_v10  ;;  %v204_v12 = vpop.xlane.xlu0 %203 }
 0x353   :  { %v208_v13 = vmul.f32 0.03125, %v204_v12 }
 0x354   :  { %v211_v14 = vadd.f32 1e-05, %v209_v11 }
 0x355   :  { %v210_v15 = vadd.f32 1e-05, %v208_v13 }
 0x356   :  { %3169 = vrsqrt.f32 %v211_v14 }
 0x357   :  { %3171 = vrsqrt.f32 %v210_v15 }
 0x360   :  { %v3170_v16 = vpop.eup %3169 }
 0x361   :  { %v3172_v18 = vpop.eup %3171  ;;  %v215_v19 = vmul.f32 %v3170_v16, %v199_v62 }
 0x362   :  { %v214_v20 = vmul.f32 %v3172_v18, %v198_v63 }
 0x363   :  { %v221_v22 = vmul.f32 %v2719_v17, %v215_v19 }
 0x364   :  { %v220_v23 = vmul.f32 %v2719_v17, %v214_v20 }
 0x365   :  { %v3403_v25 = vadd.f32 %v2720_v21, %v221_v22 }
 0x366   :  { %v3401_v24 = vadd.f32 %v2720_v21, %v220_v23 }
 0x368   :  { %2900 = vmatprep.mubr.msk.f32.mxu1 %vm188_vm1, %v3401_v24 }
 0x369   :  { %2901 = vmatmul.mubr.msk.f32.vlgmr.msra.gmra.mrb[0].mxu1 %vm188_vm1, %v3403_v25 }
 0x36a   :  { %2915 = vmatprep.mubr.msk.f32.mxu1 %vm3286_vm2, %v3285_v26 }
 0x43c   :  { %v2902_v28 = vpop.f32.mrb[0].mxu1 }
 0x43d   :  { %v3418_v29 = vadd.f32 %v2902_v28, %v2721_v27  ;;  %v312_v30 = vpop.f32.mrb[1].mxu1 }
 0x43e   :  { %v3420_v31 = vadd.f32 %v2721_v27, %v312_v30 }
 0x43f   :  { %399 = vrot.lane.b32.xlu1 %v3418_v29, %s3287_s17 }
 0x440   :  { %322 = vrot.lane.b32.xlu0 %v3420_v31, %s3287_s17 }
 0x4b1   :  { %v400_v33 = vpop.permute.xlu1 %399 }
 0x4b2   :  { %v323_v32 = vpop.permute.xlu0 %322 }
 0x4b3   :  { %2904 = vmatpush3.xpose.msk.msra.mxu0 %vm40_vm0, %v323_v32 }
 0x4b4   :  { %2908 = vmatprep.subr.mxu0 %v3285_v26 }
 0x4b6   :  { %2906 = vmatmul.mubr.msk.f32.vlgmr.msra.gmra.mrb[2].mxu0 %vm40_vm0, %v3420_v31 }
 0x4b7   :  { %2909 = vmatpush3.xpose.msk.msra.mxu0 %vm40_vm0, %v400_v33  ;;  %2910 = vmatprep.mubr.msk.f32.mxu0 %vm3286_vm2, %v3285_v26 }
 0x4b8   :  { %2918 = vmatprep.subr.mxu0 %v3285_v26 }
 0x4ba   :  { %2911 = vmatmul.mubr.msk.f32.vlgmr.msra.gmra.mrb[4].mxu0 %vm40_vm0, %v3418_v29 }
 0x4bb   :  { %2920 = vmatprep.mubr.msk.f32.mxu0 %vm3286_vm2, %v3285_v26 }
 0x589   :  { %v394_v34 = vpop.f32.mrb[2].mxu0 }
 0x58a   :  { %v475_v35 = vmul.f32 0.25, %v394_v34  ;;  %v2907_v36 = vpop.f32.mrb[3].mxu0  ;;  %v994_v34 = vld [vmem:[%s3828_s7] sm:$0xff] }
 0x58b   :  { %v996_v36 = vld [vmem:[%s3828_s7 + $0x10] sm:$0xff] }
 0x58c   :  { %v478_v37 = vsel %vm477_vm3, %v475_v35, -inf }
 0x58d   :  { %479 = vmax.xlane.f32.xlu1 %v478_v37  ;;  %v471_v38 = vpop.f32.mrb[4].mxu0  ;;  %v997_v37 = vld [vmem:[%s3828_s7 + $0x18] sm:$0xff] }
 0x58e   :  { %v476_v39 = vmul.f32 0.25, %v471_v38  ;;  %v2912_v40 = vpop.f32.mrb[5].mxu0  ;;  %v3087_v38 = vpack.c.bf16 %v997_v37, %v996_v36 }
 0x590   :  { %v481_v41 = vsel %vm477_vm3, %v476_v39, -inf }
 0x591   :  { %482 = vmax.xlane.f32.xlu0 %v481_v41 }
 0x59e   :  { %576 = vrot.lane.b32.xlu1 %v3418_v29, %s3288_s18 }
 0x5a2   :  { %654 = vrot.lane.b32.xlu1 %v3420_v31, %s3289_s19 }
 0x5a6   :  { %732 = vrot.lane.b32.xlu1 %v3418_v29, %s3289_s19 }
 0x5a7   :  { %500 = vrot.lane.b32.xlu0 %v3420_v31, %s3288_s18 }
 0x61a   :  { %v480_v42 = vpop.xlane.xlu1 %479 }
 0x61b   :  { %v484_v43 = vsub.f32 %v475_v35, %v480_v42 }
 0x61d   :  { %v486_v44 = vmul.f32 1.442695, %v484_v43 }
 0x61e   :  { %v577_v45 = vpop.permute.xlu1 %576  ;;  %v483_v46 = vpop.xlane.xlu0 %482 }
 0x61f   :  { %3173 = vpow2.f32 %v486_v44  ;;  %v485_v47 = vsub.f32 %v476_v39, %v483_v46  ;;  %2919 = vmatpush3.msra.mxu0 %v577_v45 }
 0x620   :  { %2928 = vmatprep.subr.mxu0 %v3285_v26 }
 0x621   :  { %v488_v48 = vmul.f32 1.442695, %v485_v47  ;;  %v998_v47 = vlaneseq }
 0x622   :  { %v501_v49 = vpop.permute.xlu0 %500  ;;  %v655_v54 = vpop.permute.xlu1 %654 }
 0x623   :  { %3175 = vpow2.f32 %v488_v48  ;;  %2914 = vmatpush3.msra.mxu1 %v501_v49  ;;  %v3507_v48 = vshrl.u32 %v998_v47, 7 }
 0x624   :  { %2923 = vmatprep.subr.mxu1 %v3285_v26 }
 0x625   :  { %v1000_v49 = vsub.s32 0, %v3507_v48  ;;  %v1130_v37 = vsub.s32 1, %v3507_v48 }
 0x626   :  { %v733_v55 = vpop.permute.xlu1 %732 }
 0x629   :  { %v3174_v50 = vpop.eup %3173 }
 0x62a   :  { %v490_v51 = vsel %vm477_vm3, %v3174_v50, 0.0 }
 0x62b   :  { %491 = vadd.xlane.f32.xlu0 %v490_v51 }
 0x62d   :  { %v3176_v52 = vpop.eup %3175 }
 0x62e   :  { %v493_v53 = vsel %vm477_vm3, %v3176_v52, 0.0 }
 0x62f   :  { %494 = vadd.xlane.f32.xlu1 %v493_v53 }
 0x640   :  { %730 = vrot.lane.b32.xlu1 %v3418_v29, %s3290_s20 }
 0x641   :  { %652 = vrot.lane.b32.xlu0 %v3420_v31, %s3290_s20 }
 0x6b8   :  { %v492_v56 = vpop.xlane.xlu0 %491 }
 0x6b9   :  { %3177 = vrcp.f32 %v492_v56 }
 0x6bc   :  { %v495_v57 = vpop.xlane.xlu1 %494  ;;  %v653_v62 = vpop.permute.xlu0 %652 }
 0x6bd   :  { %3179 = vrcp.f32 %v495_v57 }
 0x6c0   :  { %v731_v63 = vpop.permute.xlu1 %730 }
 0x6c3   :  { %v3178_v58 = vpop.eup %3177 }
 0x6c4   :  { %v498_v59 = vmul.f32 %v3178_v58, %v3174_v50  ;;  %v3513_v50 = vld [vmem:[%s3829_s8] sm:$0x7f] }
 0x6c5   :  { %v1001_v51 = vrot.slane %v3513_v50, %v1000_v49 }
 0x6c6   :  { %2916 = vmatmul.mubr.msk.f32.vlgmr.msra.gmra.mrb[2].mxu1 %vm477_vm3, %v498_v59 }
 0x6c7   :  { %v3180_v60 = vpop.eup %3179  ;;  %2924 = vmatpush3.xpose.msk.msra.mxu1 %vm40_vm0, %v655_v54  ;;  %2925 = vmatprep.mubr.msk.f32.mxu1 %vm3286_vm2, %v3285_v26 }
 0x6c8   :  { %v499_v61 = vmul.f32 %v3180_v60, %v3176_v52  ;;  %2933 = vmatprep.subr.mxu1 %v3285_v26 }
 0x6ca   :  { %2921 = vmatmul.mubr.msk.f32.vlgmr.msra.gmra.mrb[6].mxu0 %vm477_vm3, %v499_v61  ;;  %2926 = vmatmul.mubr.msk.f32.vlgmr.msra.gmra.mrb[4].mxu1 %vm40_vm0, %v653_v62 }
 0x6cb   :  { %2929 = vmatpush3.xpose.msk.msra.mxu0 %vm40_vm0, %v733_v55  ;;  %2930 = vmatprep.mubr.msk.f32.mxu0 %vm3286_vm2, %v3285_v26 }
 0x6cc   :  { %2938 = vmatprep.subr.mxu0 %v3285_v26  ;;  %2935 = vmatprep.mubr.msk.f32.mxu1 %vm3286_vm2, %v3285_v26 }
 0x6ce   :  { %2931 = vmatmul.mubr.msk.f32.vlgmr.msra.gmra.mrb[8].mxu0 %vm40_vm0, %v731_v63 }
 0x6cf   :  { %2940 = vmatprep.mubr.msk.f32.mxu0 %vm3286_vm2, %v3285_v26 }
 0x799   :  { %v3472_v0 = vpop.f32.mrb[2].mxu1 }
 0x79a   :  { %v2917_v1 = vpop.f32.mrb[3].mxu1 }
 0x79d   :  { %v3474_v2 = vpop.f32.mrb[6].mxu0  ;;  %v726_v3 = vpop.f32.mrb[4].mxu1 }
 0x79e   :  { %v808_v4 = vmul.f32 0.25, %v726_v3  ;;  %v2922_v5 = vpop.f32.mrb[7].mxu0  ;;  %v2927_v6 = vpop.f32.mrb[5].mxu1 }
 0x79f   :  { %v2739_v5 = vld [vmem:[%s3828_s7 + $0x28] sm:$0xff] }
 0x7a0   :  { %v810_v7 = vsel %vm477_vm3, %v808_v4, -inf }
 0x7a1   :  { %811 = vmax.xlane.f32.xlu0 %v810_v7  ;;  %v804_v8 = vpop.f32.mrb[8].mxu0  ;;  %v2740_v7 = vld [vmem:[%s3828_s7 + $0x30] sm:$0xff] }
 0x7a2   :  { %v809_v9 = vmul.f32 0.25, %v804_v8  ;;  %v2932_v10 = vpop.f32.mrb[9].mxu0  ;;  %v2741_v8 = vld [vmem:[%s3828_s7 + $0x38] sm:$0xff] }
 0x7a4   :  { %v813_v11 = vsel %vm477_vm3, %v809_v9, -inf }
 0x7a5   :  { %814 = vmax.xlane.f32.xlu1 %v813_v11 }
 0x7b6   :  { %908 = vrot.lane.b32.xlu1 %v3418_v29, %s3291_s21 }
 0x82e   :  { %v812_v12 = vpop.xlane.xlu0 %811 }
 0x82f   :  { %v816_v13 = vsub.f32 %v808_v4, %v812_v12 }
 0x831   :  { %v818_v14 = vmul.f32 1.442695, %v816_v13 }
 0x832   :  { %v815_v15 = vpop.xlane.xlu1 %814 }
 0x833   :  { %3181 = vpow2.f32 %v818_v14  ;;  %v817_v16 = vsub.f32 %v809_v9, %v815_v15  ;;  %v3095_v9 = vpack.c.bf16 %v2741_v8, %v2740_v7 }
 0x835   :  { %v820_v17 = vmul.f32 1.442695, %v817_v16  ;;  %v1113_v16 = vsub.s32 3, %v3507_v48 }
 0x836   :  { %v909_v18 = vpop.permute.xlu1 %908 }
 0x837   :  { %3183 = vpow2.f32 %v820_v17  ;;  %2939 = vmatpush3.msra.mxu0 %v909_v18  ;;  %v1119_v17 = vsub.s32 4, %v3507_v48  ;;  %v1114_v18 = vrot.slane %v3513_v50, %v1113_v16 }
 0x83d   :  { %v3182_v19 = vpop.eup %3181 }
 0x83e   :  { %v822_v20 = vsel %vm477_vm3, %v3182_v19, 0.0 }
 0x83f   :  { %823 = vadd.xlane.f32.xlu0 %v822_v20 }
 0x841   :  { %v3184_v21 = vpop.eup %3183 }
 0x842   :  { %v825_v22 = vsel %vm477_vm3, %v3184_v21, 0.0 }
 0x843   :  { %826 = vadd.xlane.f32.xlu0 %v825_v22 }
 0x859   :  { %832 = vrot.lane.b32.xlu0 %v3420_v31, %s3291_s21  ;;  %v995_v31 = vld [vmem:[%s3828_s7 + $0x8] sm:$0xff] }
 0x85a   :  { %v3083_v35 = vpack.c.bf16 %v995_v31, %v994_v34  ;;  %v2746_v34 = vld [vmem:[%s3828_s7 + $0x50] sm:$0xff] }
 0x8cc   :  { %v824_v23 = vpop.xlane.xlu0 %823 }
 0x8cd   :  { %3185 = vrcp.f32 %v824_v23 }
 0x8d0   :  { %v827_v27 = vpop.xlane.xlu0 %826 }
 0x8d1   :  { %3187 = vrcp.f32 %v827_v27 }
 0x8d4   :  { %v833_v28 = vpop.permute.xlu0 %832 }
 0x8d5   :  { %2934 = vmatpush3.msra.mxu1 %v833_v28 }
 0x8d6   :  { %3084 = vmatprep.subr.bf16.mxu1 %v3083_v35 }
 0x8d7   :  { %v3186_v29 = vpop.eup %3185 }
 0x8d8   :  { %v830_v30 = vmul.f32 %v3186_v29, %v3182_v19 }
 0x8da   :  { %2936 = vmatmul.mubr.msk.f32.vlgmr.msra.gmra.mrb[6].mxu1 %vm477_vm3, %v830_v30 }
 0x8db   :  { %v3188_v32 = vpop.eup %3187  ;;  %3086 = vmatpush3.bf16.msra.mxu1 %v3083_v35  ;;  %v2747_v35 = vld [vmem:[%s3828_s7 + $0x58] sm:$0xff] }
 0x8dc   :  { %v831_v33 = vmul.f32 %v3188_v32, %v3184_v21  ;;  %3088 = vmatprep.subr.bf16.mxu1 %v3087_v38  ;;  %v1120_v21 = vrot.slane %v3513_v50, %v1119_v17  ;;  %v2744_v32 = vld [vmem:[%s3828_s7 + $0x40] sm:$0xff]  ;;  %v3103_v36 = vpack.c.bf16 %v2747_v35, %v2746_v34 }
 0x8de   :  { %2941 = vmatmul.mubr.msk.f32.vlgmr.msra.gmra.mrb[10].mxu0 %vm477_vm3, %v831_v33  ;;  %v2745_v33 = vld [vmem:[%s3828_s7 + $0x48] sm:$0xff] }
 0x8df   :  { %3090 = vmatpush3.bf16.msra.mxu1 %v3087_v38  ;;  %v3099_v31 = vpack.c.bf16 %v2745_v33, %v2744_v32  ;;  %v1131_v38 = vrot.slane %v3513_v50, %v1130_v37 }
 0x8e1   :  { %3100 = vmatprep.subr.bf16.mxu1 %v3099_v31 }
 0x9ad   :  { %v904_v39 = vpop.f32.mrb[6].mxu1 }
 0x9ae   :  { %986 = vrot.lane.b32.xlu1 %v904_v39, %s3292_s28  ;;  %v2937_v40 = vpop.f32.mrb[7].mxu1 }
 0x9b1   :  { %v980_v41 = vpop.f32.mrb[10].mxu0 }
 0x9b2   :  { %988 = vrot.lane.b32.xlu1 %v980_v41, %s3292_s28  ;;  %v2942_v42 = vpop.f32.mrb[11].mxu0 }
 0xa20   :  { %v987_v43 = vpop.permute.xlu1 %986 }
 0xa21   :  { %v992_v44 = vsel %vm40_vm0, %v3472_v0, %v987_v43 }
 0xa22   :  { %2951 = vmatprep.mubr.msk.f32.mxu1 %vm188_vm1, %v992_v44 }
 0xa24   :  { %v989_v45 = vpop.permute.xlu1 %988 }
 0xa25   :  { %v993_v46 = vsel %vm40_vm0, %v3474_v2, %v989_v45 }
 0xa26   :  { %2952 = vmatmul.mubr.msk.f32.vlgmr.msra.gmra.mrb[8].mxu1 %vm188_vm1, %v993_v46 }
 0xa27   :  { %3102 = vmatpush3.bf16.msra.mxu1 %v3099_v31 }
 0xa28   :  { %3104 = vmatprep.subr.bf16.mxu1 %v3103_v36 }
 0xa2b   :  { %3106 = vmatpush3.bf16.msra.mxu1 %v3103_v36  ;;  %v1351_v36 = vsub.s32 5, %v3507_v48 }
 0xa2c   :  { %2987 = vmatprep.subr.mxu1 %v3285_v26 }
 0xaf9   :  { %v2953_v52 = vpop.f32.mrb[8].mxu1 }
 0xafa   :  { %v1080_v53 = vadd.f32 %v2953_v52, %v1001_v51  ;;  %v1074_v54 = vpop.f32.mrb[9].mxu1 }
 0xafb   :  { %v1075_v55 = vadd.f32 %v1074_v54, %v1001_v51 }
 0xafc   :  { %v1084_v56 = vadd.f32 %v1080_v53, %v3403_v25 }
 0xafd   :  { %v1083_v57 = vadd.f32 %v1075_v55, %v3401_v24  ;;  %v2738_v24 = vld [vmem:[%s3828_s7 + $0x20] sm:$0xff] }
 0xafe   :  { %v1088_v58 = vsel %vm188_vm1, %v1084_v56, 0.0  ;;  %v3091_v6 = vpack.c.bf16 %v2739_v5, %v2738_v24 }
 0xaff   :  { %1089 = vadd.xlane.f32.xlu1 %v1088_v58  ;;  %v1085_v59 = vsel %vm188_vm1, %v1083_v57, 0.0 }
 0xb00   :  { %1086 = vadd.xlane.f32.xlu0 %v1085_v59  ;;  %3092 = vmatprep.subr.bf16.mxu0 %v3091_v6 }
 0xb01   :  { %3094 = vmatpush3.bf16.msra.mxu0 %v3091_v6 }
 0xb02   :  { %3096 = vmatprep.subr.bf16.mxu0 %v3095_v9 }
 0xb05   :  { %3098 = vmatpush3.bf16.msra.mxu0 %v3095_v9 }
 0xb8c   :  { %v1090_v60 = vpop.xlane.xlu1 %1089 }
 0xb8d   :  { %v1092_v61 = vmul.f32 0.03125, %v1090_v60  ;;  %v1087_v62 = vpop.xlane.xlu0 %1086 }
 0xb8e   :  { %v1091_v63 = vmul.f32 0.03125, %v1087_v62 }
 0xb8f   :  { %v1094_v0 = vsub.f32 %v1084_v56, %v1092_v61 }
 0xb90   :  { %v1093_v1 = vsub.f32 %v1083_v57, %v1091_v63 }
 0xb91   :  { %v1096_v4 = vmul.f32 %v1094_v0, %v1094_v0 }
 0xb92   :  { %v1095_v2 = vmul.f32 %v1093_v1, %v1093_v1 }
 0xb93   :  { %v1100_v25 = vsel %vm188_vm1, %v1096_v4, 0.0 }
 0xb94   :  { %v1097_v3 = vsel %vm188_vm1, %v1095_v2, 0.0 }
 0xb95   :  { %1098 = vadd.xlane.f32.xlu0 %v1097_v3 }
 0xb99   :  { %1101 = vadd.xlane.f32.xlu0 %v1100_v25 }
 0xc22   :  { %v1099_v10 = vpop.xlane.xlu0 %1098 }
 0xc23   :  { %v1103_v11 = vmul.f32 0.03125, %v1099_v10 }
 0xc25   :  { %v1105_v12 = vadd.f32 1e-05, %v1103_v11 }
 0xc26   :  { %v1102_v13 = vpop.xlane.xlu0 %1101 }
 0xc27   :  { %3189 = vrsqrt.f32 %v1105_v12  ;;  %v1104_v14 = vmul.f32 0.03125, %v1102_v13 }
 0xc29   :  { %v1106_v15 = vadd.f32 1e-05, %v1104_v14 }
 0xc2b   :  { %3191 = vrsqrt.f32 %v1106_v15 }
 0xc31   :  { %v3190_v19 = vpop.eup %3189 }
 0xc32   :  { %v1109_v20 = vmul.f32 %v3190_v19, %v1093_v1  ;;  %v1238_v1 = vsub.s32 2, %v3507_v48 }
 0xc34   :  { %v1115_v22 = vmul.f32 %v1114_v18, %v1109_v20  ;;  %v1239_v2 = vrot.slane %v3513_v50, %v1238_v1 }
 0xc35   :  { %v3192_v23 = vpop.eup %3191 }
 0xc36   :  { %v1110_v27 = vmul.f32 %v3192_v23, %v1094_v0  ;;  %v1121_v28 = vadd.f32 %v1120_v21, %v1115_v22  ;;  %v2752_v22 = vld [vmem:[%s3826_s5 + $0x28] sm:$0xff] }
 0xc38   :  { %v1116_v29 = vmul.f32 %v1114_v18, %v1110_v27  ;;  %2962 = vmatprep.mubr.msk.f32.mxu0 %vm188_vm1, %v1121_v28  ;;  %v2753_v27 = vld [vmem:[%s3826_s5 + $0x30] sm:$0xff] }
 0xc3a   :  { %v1122_v30 = vadd.f32 %v1120_v21, %v1116_v29  ;;  %v2751_v21 = vld [vmem:[%s3826_s5 + $0x20] sm:$0xff] }
 0xc3b   :  { %v3107_v23 = vpack.c.bf16 %v2752_v22, %v2751_v21 }
 0xc3c   :  { %2963 = vmatmul.mubr.msk.f32.vlgmr.msra.gmra.mrb[12].mxu0 %vm188_vm1, %v1122_v30 }
 0xc3d   :  { %3108 = vmatprep.subr.bf16.mxu0 %v3107_v23 }
 0xc3e   :  { %3110 = vmatpush3.bf16.msra.mxu0 %v3107_v23 }
 0xd0f   :  { %v2964_v39 = vpop.f32.mrb[12].mxu0 }
 0xd10   :  { %v1210_v40 = vadd.f32 %v2964_v39, %v1131_v38  ;;  %v1204_v41 = vpop.f32.mrb[13].mxu0  ;;  %v1352_v39 = vrot.slane %v3513_v50, %v1351_v36 }
 0xd11   :  { %v1205_v42 = vadd.f32 %v1204_v41, %v1131_v38  ;;  %v1357_v38 = vsub.s32 6, %v3507_v48 }
 0xd12   :  { %v1216_v43 = vmul.f32 0.044715, %v1210_v40  ;;  %v1214_v62 = vmul.f32 0.5, %v1210_v40 }
 0xd13   :  { %v1215_v44 = vmul.f32 0.044715, %v1205_v42  ;;  %v1213_v60 = vmul.f32 0.5, %v1205_v42 }
 0xd14   :  { %v1218_v45 = vmul.f32 %v1216_v43, %v1210_v40 }
 0xd15   :  { %v1217_v46 = vmul.f32 %v1215_v44, %v1205_v42  ;;  %v1358_v44 = vrot.slane %v3513_v50, %v1357_v38 }
 0xd16   :  { %v1220_v51 = vmul.f32 %v1218_v45, %v1210_v40 }
 0xd17   :  { %v1219_v52 = vmul.f32 %v1217_v46, %v1205_v42 }
 0xd18   :  { %v1222_v53 = vadd.f32 %v1220_v51, %v1210_v40 }
 0xd19   :  { %v1221_v54 = vadd.f32 %v1219_v52, %v1205_v42 }
 0xd1a   :  { %v1224_v55 = vmul.f32 0.7978846, %v1222_v53  ;;  %v2756_v53 = vld [vmem:[%s3827_s6 + $0x1] ss:$0 sm:$0xff] }
 0xd1b   :  { %v1223_v56 = vmul.f32 0.7978846, %v1221_v54 }
 0xd1c   :  { %3193 = vtanh.f32 %v1224_v55 }
 0xd1d   :  { %3195 = vtanh.f32 %v1223_v56 }
 0xd26   :  { %v3194_v57 = vpop.eup %3193 }
 0xd27   :  { %v3196_v58 = vpop.eup %3195  ;;  %v1228_v59 = vadd.f32 1.0, %v3194_v57 }
 0xd28   :  { %v1227_v61 = vadd.f32 1.0, %v3196_v58 }
 0xd29   :  { %v1230_v0 = vmul.f32 %v1228_v59, %v1214_v62 }
 0xd2a   :  { %v1229_v63 = vmul.f32 %v1227_v61, %v1213_v60 }
 0xd2c   :  { %2973 = vmatprep.mubr.msk.f32.mxu1 %vm188_vm1, %v1229_v63 }
 0xd2d   :  { %2974 = vmatmul.mubr.msk.f32.vlgmr.msra.gmra.mrb[10].mxu1 %vm188_vm1, %v1230_v0 }
 0xd2e   :  { %2989 = vmatprep.mubr.msk.f32.mxu1 %vm3286_vm2, %v3285_v26 }
 0xe00   :  { %v2975_v3 = vpop.f32.mrb[10].mxu1 }
 0xe01   :  { %v1318_v4 = vadd.f32 %v2975_v3, %v1239_v2  ;;  %v1312_v25 = vpop.f32.mrb[11].mxu1 }
 0xe02   :  { %v1313_v24 = vadd.f32 %v1312_v25, %v1239_v2 }
 0xe03   :  { %v1322_v5 = vadd.f32 %v1318_v4, %v1122_v30 }
 0xe04   :  { %v1321_v6 = vadd.f32 %v1313_v24, %v1121_v28  ;;  %v2754_v28 = vld [vmem:[%s3826_s5 + $0x38] sm:$0xff] }
 0xe05   :  { %v1326_v7 = vsel %vm188_vm1, %v1322_v5, 0.0  ;;  %v3111_v29 = vpack.c.bf16 %v2754_v28, %v2753_v27 }
 0xe06   :  { %1327 = vadd.xlane.f32.xlu1 %v1326_v7  ;;  %v1323_v8 = vsel %vm188_vm1, %v1321_v6, 0.0 }
 0xe07   :  { %1324 = vadd.xlane.f32.xlu0 %v1323_v8  ;;  %3112 = vmatprep.subr.bf16.mxu0 %v3111_v29 }
 0xe08   :  { %3114 = vmatpush3.bf16.msra.mxu0 %v3111_v29 }
 0xe09   :  { %2992 = vmatprep.subr.mxu0 %v3285_v26 }
 0xe93   :  { %v1328_v9 = vpop.xlane.xlu1 %1327 }
 0xe94   :  { %v1330_v10 = vmul.f32 0.03125, %v1328_v9  ;;  %v1325_v11 = vpop.xlane.xlu0 %1324 }
 0xe95   :  { %v1329_v12 = vmul.f32 0.03125, %v1325_v11 }
 0xe96   :  { %v1332_v13 = vsub.f32 %v1322_v5, %v1330_v10 }
 0xe97   :  { %v1331_v14 = vsub.f32 %v1321_v6, %v1329_v12 }
 0xe98   :  { %v1334_v15 = vmul.f32 %v1332_v13, %v1332_v13 }
 0xe99   :  { %v1333_v18 = vmul.f32 %v1331_v14, %v1331_v14 }
 0xe9a   :  { %v1338_v19 = vsel %vm188_vm1, %v1334_v15, 0.0 }
 0xe9b   :  { %1339 = vadd.xlane.f32.xlu1 %v1338_v19  ;;  %v1335_v20 = vsel %vm188_vm1, %v1333_v18, 0.0 }
 0xe9c   :  { %1336 = vadd.xlane.f32.xlu0 %v1335_v20 }
 0xf28   :  { %v1340_v30 = vpop.xlane.xlu1 %1339 }
 0xf29   :  { %v1342_v32 = vmul.f32 0.03125, %v1340_v30  ;;  %v1337_v33 = vpop.xlane.xlu0 %1336 }
 0xf2a   :  { %v1341_v34 = vmul.f32 0.03125, %v1337_v33 }
 0xf2b   :  { %v1344_v31 = vadd.f32 1e-05, %v1342_v32 }
 0xf2c   :  { %v1343_v35 = vadd.f32 1e-05, %v1341_v34 }
 0xf2d   :  { %3197 = vrsqrt.f32 %v1344_v31 }
 0xf2e   :  { %3199 = vrsqrt.f32 %v1343_v35 }
 0xf37   :  { %v3198_v40 = vpop.eup %3197 }
 0xf38   :  { %v3200_v41 = vpop.eup %3199  ;;  %v1348_v42 = vmul.f32 %v3198_v40, %v1332_v13 }
 0xf39   :  { %v1347_v43 = vmul.f32 %v3200_v41, %v1331_v14 }
 0xf3a   :  { %v1354_v45 = vmul.f32 %v1352_v39, %v1348_v42 }
 0xf3b   :  { %v1353_v46 = vmul.f32 %v1352_v39, %v1347_v43 }
 0xf3c   :  { %v3598_v52 = vadd.f32 %v1358_v44, %v1354_v45 }
 0xf3d   :  { %v3596_v51 = vadd.f32 %v1358_v44, %v1353_v46 }
 0xf3f   :  { %2984 = vmatprep.mubr.msk.f32.mxu0 %vm188_vm1, %v3596_v51 }
 0xf40   :  { %2985 = vmatmul.mubr.msk.f32.vlgmr.msra.gmra.mrb[14].mxu0 %vm188_vm1, %v3598_v52 }
 0xf41   :  { %2994 = vmatprep.mubr.msk.f32.mxu0 %vm3286_vm2, %v3285_v26 }
0x1013   :  { %v2986_v50 = vpop.f32.mrb[14].mxu0 }
0x1014   :  { %v3609_v54 = vadd.f32 %v2986_v50, %v2756_v53  ;;  %v1448_v55 = vpop.f32.mrb[15].mxu0 }
0x1015   :  { %v3611_v56 = vadd.f32 %v2756_v53, %v1448_v55 }
0x1016   :  { %1535 = vrot.lane.b32.xlu1 %v3609_v54, %s3287_s17 }
0x1017   :  { %1458 = vrot.lane.b32.xlu0 %v3611_v56, %s3287_s17 }
0x1088   :  { %v1536_v57 = vpop.permute.xlu1 %1535 }
0x1089   :  { %2993 = vmatpush3.xpose.msk.msra.mxu0 %vm40_vm0, %v1536_v57  ;;  %v1459_v58 = vpop.permute.xlu0 %1458 }
0x108a   :  { %2988 = vmatpush3.xpose.msk.msra.mxu1 %vm40_vm0, %v1459_v58  ;;  %3002 = vmatprep.subr.mxu0 %v3285_v26 }
0x108b   :  { %2997 = vmatprep.subr.mxu1 %v3285_v26 }
0x108c   :  { %2995 = vmatmul.mubr.msk.f32.vlgmr.msra.gmra.mrb[16].mxu0 %vm40_vm0, %v3609_v54 }
0x108d   :  { %2990 = vmatmul.mubr.msk.f32.vlgmr.msra.gmra.mrb[12].mxu1 %vm40_vm0, %v3611_v56  ;;  %3004 = vmatprep.mubr.msk.f32.mxu0 %vm3286_vm2, %v3285_v26 }
0x108e   :  { %2999 = vmatprep.mubr.msk.f32.mxu1 %vm3286_vm2, %v3285_v26 }
0x115f   :  { %v1607_v59 = vpop.f32.mrb[16].mxu0 }
0x1160   :  { %v1612_v60 = vmul.f32 0.25, %v1607_v59  ;;  %v1530_v61 = vpop.f32.mrb[12].mxu1  ;;  %v2996_v62 = vpop.f32.mrb[17].mxu0 }
0x1161   :  { %v1611_v63 = vmul.f32 0.25, %v1530_v61  ;;  %v2991_v0 = vpop.f32.mrb[13].mxu1 }
0x1162   :  { %v1616_v2 = vsel %vm477_vm3, %v1612_v60, -inf }
0x1163   :  { %1617 = vmax.xlane.f32.xlu0 %v1616_v2  ;;  %v1613_v3 = vsel %vm477_vm3, %v1611_v63, -inf }
0x1164   :  { %1614 = vmax.xlane.f32.xlu1 %v1613_v3 }
0x1175   :  { %1711 = vrot.lane.b32.xlu1 %v3609_v54, %s3288_s18 }
0x1179   :  { %1635 = vrot.lane.b32.xlu0 %v3611_v56, %s3288_s18  ;;  %1789 = vrot.lane.b32.xlu1 %v3611_v56, %s3289_s19 }
0x117d   :  { %1867 = vrot.lane.b32.xlu1 %v3609_v54, %s3289_s19 }
0x11f0   :  { %v1618_v4 = vpop.xlane.xlu0 %1617 }
0x11f1   :  { %v1620_v25 = vsub.f32 %v1612_v60, %v1618_v4  ;;  %v1615_v24 = vpop.xlane.xlu1 %1614  ;;  %v2771_v4 = vld [vmem:[%s3828_s7 + $0x60] sm:$0xff] }
0x11f2   :  { %v1619_v5 = vsub.f32 %v1611_v63, %v1615_v24  ;;  %v2773_v24 = vld [vmem:[%s3828_s7 + $0x70] sm:$0xff] }
0x11f3   :  { %v1623_v6 = vmul.f32 1.442695, %v1620_v25 }
0x11f4   :  { %v1621_v7 = vmul.f32 1.442695, %v1619_v5  ;;  %v1636_v8 = vpop.permute.xlu0 %1635  ;;  %v2774_v5 = vld [vmem:[%s3828_s7 + $0x78] sm:$0xff] }
0x11f5   :  { %3201 = vpow2.f32 %v1623_v6  ;;  %v1712_v9 = vpop.permute.xlu1 %1711  ;;  %2998 = vmatpush3.msra.mxu1 %v1636_v8  ;;  %v3119_v6 = vpack.c.bf16 %v2774_v5, %v2773_v24 }
0x11f6   :  { %3203 = vpow2.f32 %v1621_v7  ;;  %3003 = vmatpush3.msra.mxu0 %v1712_v9  ;;  %3007 = vmatprep.subr.mxu1 %v3285_v26 }
0x11f7   :  { %3012 = vmatprep.subr.mxu0 %v3285_v26 }
0x11f9   :  { %v1790_v14 = vpop.permute.xlu1 %1789 }
0x11fd   :  { %v1868_v15 = vpop.permute.xlu1 %1867 }
0x11ff   :  { %v3202_v10 = vpop.eup %3201 }
0x1200   :  { %v3204_v11 = vpop.eup %3203  ;;  %v1628_v12 = vsel %vm477_vm3, %v3202_v10, 0.0 }
0x1201   :  { %1629 = vadd.xlane.f32.xlu1 %v1628_v12  ;;  %v1625_v13 = vsel %vm477_vm3, %v3204_v11, 0.0 }
0x1202   :  { %1626 = vadd.xlane.f32.xlu0 %v1625_v13 }
0x1212   :  { %1865 = vrot.lane.b32.xlu1 %v3609_v54, %s3290_s20 }
0x1218   :  { %1787 = vrot.lane.b32.xlu0 %v3611_v56, %s3290_s20 }
0x128e   :  { %v1630_v18 = vpop.xlane.xlu1 %1629 }
0x128f   :  { %3205 = vrcp.f32 %v1630_v18  ;;  %v1627_v19 = vpop.xlane.xlu0 %1626 }
0x1290   :  { %3207 = vrcp.f32 %v1627_v19 }
0x1292   :  { %v1866_v27 = vpop.permute.xlu1 %1865 }
0x1293   :  { %v1788_v28 = vpop.permute.xlu0 %1787 }
0x1299   :  { %v3206_v20 = vpop.eup %3205 }
0x129a   :  { %v3208_v21 = vpop.eup %3207  ;;  %v1634_v22 = vmul.f32 %v3206_v20, %v3202_v10 }
0x129b   :  { %v1633_v23 = vmul.f32 %v3208_v21, %v3204_v11 }
0x129c   :  { %3005 = vmatmul.mubr.msk.f32.vlgmr.msra.gmra.mrb[18].mxu0 %vm477_vm3, %v1634_v22 }
0x129d   :  { %3013 = vmatpush3.xpose.msk.msra.mxu0 %vm40_vm0, %v1868_v15  ;;  %3000 = vmatmul.mubr.msk.f32.vlgmr.msra.gmra.mrb[14].mxu1 %vm477_vm3, %v1633_v23  ;;  %v3697_v15 = vld [vmem:[%s3829_s8 + $0x8] sm:$0x7f] }
0x129e   :  { %3008 = vmatpush3.xpose.msk.msra.mxu1 %vm40_vm0, %v1790_v14  ;;  %3014 = vmatprep.mubr.msk.f32.mxu0 %vm3286_vm2, %v3285_v26  ;;  %v2137_v18 = vrot.slane %v3697_v15, %v1000_v49  ;;  %v2267_v5 = vrot.slane %v3697_v15, %v1130_v37 }
0x129f   :  { %3009 = vmatprep.mubr.msk.f32.mxu1 %vm3286_vm2, %v3285_v26  ;;  %3022 = vmatprep.subr.mxu0 %v3285_v26 }
0x12a0   :  { %3015 = vmatmul.mubr.msk.f32.vlgmr.msra.gmra.mrb[20].mxu0 %vm40_vm0, %v1866_v27  ;;  %3017 = vmatprep.subr.mxu1 %v3285_v26 }
0x12a1   :  { %3010 = vmatmul.mubr.msk.f32.vlgmr.msra.gmra.mrb[16].mxu1 %vm40_vm0, %v1788_v28  ;;  %3024 = vmatprep.mubr.msk.f32.mxu0 %vm3286_vm2, %v3285_v26 }
0x12a2   :  { %3019 = vmatprep.mubr.msk.f32.mxu1 %vm3286_vm2, %v3285_v26 }
0x136f   :  { %v3663_v29 = vpop.f32.mrb[18].mxu0 }
0x1370   :  { %v1707_v30 = vpop.f32.mrb[14].mxu1  ;;  %v3006_v32 = vpop.f32.mrb[19].mxu0 }
0x1371   :  { %v3001_v33 = vpop.f32.mrb[15].mxu1 }
0x1373   :  { %v1939_v34 = vpop.f32.mrb[20].mxu0 }
0x1374   :  { %v1944_v31 = vmul.f32 0.25, %v1939_v34  ;;  %v1861_v35 = vpop.f32.mrb[16].mxu1  ;;  %v3016_v39 = vpop.f32.mrb[21].mxu0 }
0x1375   :  { %v1943_v40 = vmul.f32 0.25, %v1861_v35  ;;  %v3011_v41 = vpop.f32.mrb[17].mxu1 }
0x1376   :  { %v1948_v42 = vsel %vm477_vm3, %v1944_v31, -inf  ;;  %v2778_v41 = vld [vmem:[%s3828_s7 + $0x88] sm:$0xff] }
0x1377   :  { %1949 = vmax.xlane.f32.xlu1 %v1948_v42  ;;  %v1945_v43 = vsel %vm477_vm3, %v1943_v40, -inf }
0x1378   :  { %1946 = vmax.xlane.f32.xlu0 %v1945_v43  ;;  %v2779_v43 = vld [vmem:[%s3828_s7 + $0x90] sm:$0xff] }
0x1388   :  { %2043 = vrot.lane.b32.xlu1 %v3609_v54, %s3291_s21 }
0x1404   :  { %v1950_v26 = vpop.xlane.xlu1 %1949 }
0x1405   :  { %v1952_v44 = vsub.f32 %v1944_v31, %v1950_v26  ;;  %v1947_v45 = vpop.xlane.xlu0 %1946  ;;  %v2780_v26 = vld [vmem:[%s3828_s7 + $0x98] sm:$0xff] }
0x1406   :  { %v1951_v46 = vsub.f32 %v1943_v40, %v1947_v45 }
0x1407   :  { %v1955_v53 = vmul.f32 1.442695, %v1952_v44  ;;  %v3127_v44 = vpack.c.bf16 %v2780_v26, %v2779_v43 }
0x1408   :  { %v1953_v50 = vmul.f32 1.442695, %v1951_v46  ;;  %v2044_v55 = vpop.permute.xlu1 %2043 }
0x1409   :  { %3209 = vpow2.f32 %v1955_v53  ;;  %3023 = vmatpush3.msra.mxu0 %v2044_v55 }
0x140a   :  { %3211 = vpow2.f32 %v1953_v50 }
0x1413   :  { %v3210_v57 = vpop.eup %3209 }
0x1414   :  { %v1960_v58 = vsel %vm477_vm3, %v3210_v57, 0.0  ;;  %v3212_v59 = vpop.eup %3211 }
0x1415   :  { %1961 = vadd.xlane.f32.xlu0 %v1960_v58  ;;  %v1957_v60 = vsel %vm477_vm3, %v3212_v59, 0.0  ;;  %v2250_v58 = vrot.slane %v3697_v15, %v1113_v16  ;;  %v2783_v16 = vld [vmem:[%s3828_s7 + $0xa0] sm:$0xff] }
0x1419   :  { %1958 = vadd.xlane.f32.xlu0 %v1957_v60 }
0x142f   :  { %1967 = vrot.lane.b32.xlu0 %v3611_v56, %s3291_s21  ;;  %v2772_v56 = vld [vmem:[%s3828_s7 + $0x68] sm:$0xff] }
0x1430   :  { %v3115_v25 = vpack.c.bf16 %v2772_v56, %v2771_v4  ;;  %v2784_v4 = vld [vmem:[%s3828_s7 + $0xa8] sm:$0xff] }
0x1431   :  { %v3131_v56 = vpack.c.bf16 %v2784_v4, %v2783_v16  ;;  %v2488_v4 = vrot.slane %v3697_v15, %v1351_v36  ;;  %v2789_v36 = vld [vmem:[%s3824_s3 + $0x3] ss:$0 sm:$0xff] }
0x14a2   :  { %v1962_v54 = vpop.xlane.xlu0 %1961 }
0x14a3   :  { %3213 = vrcp.f32 %v1962_v54  ;;  %v2256_v54 = vrot.slane %v3697_v15, %v1119_v17  ;;  %v2785_v17 = vld [vmem:[%s3828_s7 + $0xb0] sm:$0xff] }
0x14a6   :  { %v1959_v61 = vpop.xlane.xlu0 %1958 }
0x14a7   :  { %3215 = vrcp.f32 %v1959_v61 }
0x14aa   :  { %v1968_v62 = vpop.permute.xlu0 %1967 }
0x14ab   :  { %3018 = vmatpush3.msra.mxu1 %v1968_v62 }
0x14ac   :  { %3116 = vmatprep.subr.bf16.mxu1 %v3115_v25 }
0x14ad   :  { %v3214_v63 = vpop.eup %3213 }
0x14ae   :  { %v1966_v0 = vmul.f32 %v3214_v63, %v3210_v57 }
0x14b0   :  { %3025 = vmatmul.mubr.msk.f32.vlgmr.msra.gmra.mrb[22].mxu0 %vm477_vm3, %v1966_v0 }
0x14b1   :  { %v3216_v2 = vpop.eup %3215 }
0x14b2   :  { %v1965_v3 = vmul.f32 %v3216_v2, %v3212_v59 }
0x14b4   :  { %3020 = vmatmul.mubr.msk.f32.vlgmr.msra.gmra.mrb[18].mxu1 %vm477_vm3, %v1965_v3 }
0x14b5   :  { %3118 = vmatpush3.bf16.msra.mxu1 %v3115_v25  ;;  %v2786_v25 = vld [vmem:[%s3828_s7 + $0xb8] sm:$0xff] }
0x14b6   :  { %3120 = vmatprep.subr.bf16.mxu1 %v3119_v6  ;;  %v3135_v24 = vpack.c.bf16 %v2786_v25, %v2785_v17 }
0x14b9   :  { %3122 = vmatpush3.bf16.msra.mxu1 %v3119_v6 }
0x14ba   :  { %3132 = vmatprep.subr.bf16.mxu1 %v3131_v56 }
0x1583   :  { %v2115_v7 = vpop.f32.mrb[22].mxu0 }
0x1584   :  { %v3026_v8 = vpop.f32.mrb[23].mxu0 }
0x1587   :  { %v2039_v9 = vpop.f32.mrb[18].mxu1 }
0x1588   :  { %2121 = vrot.lane.b32.xlu1 %v2039_v9, %s3292_s28  ;;  %v3021_v10 = vpop.f32.mrb[19].mxu1 }
0x158c   :  { %2123 = vrot.lane.b32.xlu1 %v2115_v7, %s3292_s28 }
0x15fa   :  { %v2122_v11 = vpop.permute.xlu1 %2121 }
0x15fb   :  { %v2127_v12 = vsel %vm40_vm0, %v1707_v30, %v2122_v11 }
0x15fc   :  { %3035 = vmatprep.mubr.msk.f32.mxu1 %vm188_vm1, %v2127_v12 }
0x15fe   :  { %v2124_v13 = vpop.permute.xlu1 %2123 }
0x15ff   :  { %v2128_v14 = vsel %vm40_vm0, %v3663_v29, %v2124_v13 }
0x1600   :  { %3036 = vmatmul.mubr.msk.f32.vlgmr.msra.gmra.mrb[20].mxu1 %vm188_vm1, %v2128_v14 }
0x1601   :  { %3134 = vmatpush3.bf16.msra.mxu1 %v3131_v56 }
0x1602   :  { %3136 = vmatprep.subr.bf16.mxu1 %v3135_v24 }
0x1605   :  { %3138 = vmatpush3.bf16.msra.mxu1 %v3135_v24  ;;  %v2494_v24 = vrot.slane %v3697_v15, %v1357_v38 }
0x16d3   :  { %v3037_v19 = vpop.f32.mrb[20].mxu1 }
0x16d4   :  { %v2216_v20 = vadd.f32 %v3037_v19, %v2137_v18  ;;  %v2210_v21 = vpop.f32.mrb[21].mxu1 }
0x16d5   :  { %v2211_v22 = vadd.f32 %v2210_v21, %v2137_v18 }
0x16d6   :  { %v2220_v23 = vadd.f32 %v2216_v20, %v3598_v52 }
0x16d7   :  { %v2219_v27 = vadd.f32 %v2211_v22, %v3596_v51  ;;  %v2777_v51 = vld [vmem:[%s3828_s7 + $0x80] sm:$0xff] }
0x16d8   :  { %v2224_v28 = vsel %vm188_vm1, %v2220_v23, 0.0  ;;  %v3123_v42 = vpack.c.bf16 %v2778_v41, %v2777_v51 }
0x16d9   :  { %2225 = vadd.xlane.f32.xlu1 %v2224_v28  ;;  %v2221_v29 = vsel %vm188_vm1, %v2219_v27, 0.0 }
0x16da   :  { %2222 = vadd.xlane.f32.xlu0 %v2221_v29  ;;  %3124 = vmatprep.subr.bf16.mxu0 %v3123_v42 }
0x16db   :  { %3126 = vmatpush3.bf16.msra.mxu0 %v3123_v42 }
0x16dc   :  { %3128 = vmatprep.subr.bf16.mxu0 %v3127_v44 }
0x16df   :  { %3130 = vmatpush3.bf16.msra.mxu0 %v3127_v44 }
0x1766   :  { %v2226_v30 = vpop.xlane.xlu1 %2225 }
0x1767   :  { %v2228_v32 = vmul.f32 0.03125, %v2226_v30  ;;  %v2223_v33 = vpop.xlane.xlu0 %2222 }
0x1768   :  { %v2227_v34 = vmul.f32 0.03125, %v2223_v33 }
0x1769   :  { %v2230_v31 = vsub.f32 %v2220_v23, %v2228_v32 }
0x176a   :  { %v2229_v49 = vsub.f32 %v2219_v27, %v2227_v34  ;;  %v2375_v34 = vrot.slane %v3697_v15, %v1238_v1 }
0x176b   :  { %v2232_v40 = vmul.f32 %v2230_v31, %v2230_v31 }
0x176c   :  { %v2231_v35 = vmul.f32 %v2229_v49, %v2229_v49 }
0x176d   :  { %v2236_v52 = vsel %vm188_vm1, %v2232_v40, 0.0 }
0x176e   :  { %v2233_v39 = vsel %vm188_vm1, %v2231_v35, 0.0 }
0x176f   :  { %2234 = vadd.xlane.f32.xlu0 %v2233_v39 }
0x1773   :  { %2237 = vadd.xlane.f32.xlu0 %v2236_v52 }
0x17fc   :  { %v2235_v45 = vpop.xlane.xlu0 %2234 }
0x17fd   :  { %v2239_v46 = vmul.f32 0.03125, %v2235_v45 }
0x17ff   :  { %v2241_v53 = vadd.f32 1e-05, %v2239_v46 }
0x1800   :  { %v2238_v50 = vpop.xlane.xlu0 %2237 }
0x1801   :  { %3217 = vrsqrt.f32 %v2241_v53  ;;  %v2240_v55 = vmul.f32 0.03125, %v2238_v50 }
0x1803   :  { %v2242_v57 = vadd.f32 1e-05, %v2240_v55 }
0x1805   :  { %3219 = vrsqrt.f32 %v2242_v57  ;;  %v2499_v57 = vld [vmem:[%s3825_s4] sm:$0xff] }
0x180b   :  { %v3218_v59 = vpop.eup %3217 }
0x180c   :  { %v2245_v60 = vmul.f32 %v3218_v59, %v2229_v49 }
0x180e   :  { %v2251_v61 = vmul.f32 %v2250_v58, %v2245_v60  ;;  %v2501_v60 = vld [vmem:[%s3825_s4 + $0x10] sm:$0xff] }
0x180f   :  { %v3220_v62 = vpop.eup %3219 }
0x1810   :  { %v2246_v63 = vmul.f32 %v3220_v62, %v2230_v31  ;;  %v2257_v0 = vadd.f32 %v2256_v54, %v2251_v61 }
0x1812   :  { %v2252_v2 = vmul.f32 %v2250_v58, %v2246_v63  ;;  %3046 = vmatprep.mubr.msk.f32.mxu0 %vm188_vm1, %v2257_v0  ;;  %v2500_v58 = vld [vmem:[%s3825_s4 + $0x8] sm:$0xff] }
0x1813   :  { %v3139_v59 = vpack.c.bf16 %v2500_v58, %v2499_v57 }
0x1814   :  { %v2258_v3 = vadd.f32 %v2256_v54, %v2252_v2  ;;  %v2502_v54 = vld [vmem:[%s3825_s4 + $0x18] sm:$0xff] }
0x1815   :  { %3140 = vmatprep.subr.bf16.mxu0 %v3139_v59  ;;  %v3143_v61 = vpack.c.bf16 %v2502_v54, %v2501_v60  ;;  %v2792_v60 = vld [vmem:[%s3824_s3 + $0x4] ss:$0 sm:$0xff] }
0x1816   :  { %3047 = vmatmul.mubr.msk.f32.vlgmr.msra.gmra.mrb[24].mxu0 %vm188_vm1, %v2258_v3 }
0x1817   :  { %3142 = vmatpush3.bf16.msra.mxu0 %v3139_v59 }
0x1818   :  { %3144 = vmatprep.subr.bf16.mxu0 %v3143_v61 }
0x181b   :  { %3146 = vmatpush3.bf16.msra.mxu0 %v3143_v61 }
0x18e9   :  { %v3048_v6 = vpop.f32.mrb[24].mxu0 }
0x18ea   :  { %v2346_v7 = vadd.f32 %v3048_v6, %v2267_v5  ;;  %v2340_v8 = vpop.f32.mrb[25].mxu0 }
0x18eb   :  { %v2341_v9 = vadd.f32 %v2340_v8, %v2267_v5 }
0x18ec   :  { %v2352_v10 = vmul.f32 0.044715, %v2346_v7  ;;  %v2350_v30 = vmul.f32 0.5, %v2346_v7 }
0x18ed   :  { %v2351_v11 = vmul.f32 0.044715, %v2341_v9  ;;  %v2349_v37 = vmul.f32 0.5, %v2341_v9 }
0x18ee   :  { %v2354_v12 = vmul.f32 %v2352_v10, %v2346_v7 }
0x18ef   :  { %v2353_v13 = vmul.f32 %v2351_v11, %v2341_v9 }
0x18f0   :  { %v2356_v14 = vmul.f32 %v2354_v12, %v2346_v7 }
0x18f1   :  { %v2355_v18 = vmul.f32 %v2353_v13, %v2341_v9 }
0x18f2   :  { %v2358_v19 = vadd.f32 %v2356_v14, %v2346_v7 }
0x18f3   :  { %v2357_v20 = vadd.f32 %v2355_v18, %v2341_v9 }
0x18f4   :  { %v2360_v21 = vmul.f32 0.7978846, %v2358_v19 }
0x18f5   :  { %v2359_v22 = vmul.f32 0.7978846, %v2357_v20 }
0x18f6   :  { %3221 = vtanh.f32 %v2360_v21 }
0x18f7   :  { %3223 = vtanh.f32 %v2359_v22 }
0x1900   :  { %v3222_v23 = vpop.eup %3221 }
0x1901   :  { %v3224_v27 = vpop.eup %3223  ;;  %v2364_v28 = vadd.f32 1.0, %v3222_v23 }
0x1902   :  { %v2363_v29 = vadd.f32 1.0, %v3224_v27 }
0x1903   :  { %v2366_v33 = vmul.f32 %v2364_v28, %v2350_v30 }
0x1904   :  { %v2365_v32 = vmul.f32 %v2363_v29, %v2349_v37 }
0x1906   :  { %3057 = vmatprep.mubr.msk.f32.mxu1 %vm188_vm1, %v2365_v32 }
0x1907   :  { %3058 = vmatmul.mubr.msk.f32.vlgmr.msra.gmra.mrb[22].mxu1 %vm188_vm1, %v2366_v33 }
0x19da   :  { %v3059_v31 = vpop.f32.mrb[22].mxu1 }
0x19db   :  { %v2454_v49 = vadd.f32 %v3059_v31, %v2375_v34  ;;  %v2448_v35 = vpop.f32.mrb[23].mxu1 }
0x19dc   :  { %v2449_v39 = vadd.f32 %v2448_v35, %v2375_v34 }
0x19dd   :  { %v2458_v40 = vadd.f32 %v2454_v49, %v2258_v3 }
0x19de   :  { %v2457_v52 = vadd.f32 %v2449_v39, %v2257_v0 }
0x19df   :  { %v2462_v51 = vsel %vm188_vm1, %v2458_v40, 0.0 }
0x19e0   :  { %2463 = vadd.xlane.f32.xlu1 %v2462_v51  ;;  %v2459_v41 = vsel %vm188_vm1, %v2457_v52, 0.0 }
0x19e1   :  { %2460 = vadd.xlane.f32.xlu0 %v2459_v41 }
0x1a6d   :  { %v2464_v42 = vpop.xlane.xlu1 %2463 }
0x1a6e   :  { %v2466_v43 = vmul.f32 0.03125, %v2464_v42  ;;  %v2461_v26 = vpop.xlane.xlu0 %2460 }
0x1a6f   :  { %v2465_v44 = vmul.f32 0.03125, %v2461_v26 }
0x1a70   :  { %v2468_v45 = vsub.f32 %v2458_v40, %v2466_v43 }
0x1a71   :  { %v2467_v46 = vsub.f32 %v2457_v52, %v2465_v44 }
0x1a72   :  { %v2470_v53 = vmul.f32 %v2468_v45, %v2468_v45 }
0x1a73   :  { %v2469_v1 = vmul.f32 %v2467_v46, %v2467_v46 }
0x1a74   :  { %v2474_v50 = vsel %vm188_vm1, %v2470_v53, 0.0 }
0x1a75   :  { %2475 = vadd.xlane.f32.xlu1 %v2474_v50  ;;  %v2471_v55 = vsel %vm188_vm1, %v2469_v1, 0.0 }
0x1a76   :  { %2472 = vadd.xlane.f32.xlu0 %v2471_v55 }
0x1b02   :  { %v2476_v62 = vpop.xlane.xlu1 %2475 }
0x1b03   :  { %v2478_v63 = vmul.f32 0.03125, %v2476_v62  ;;  %v2473_v0 = vpop.xlane.xlu0 %2472  ;;  %v2793_v62 = vld [vmem:[%s3824_s3 + $0x5] ss:$0 sm:$0xff] }
0x1b04   :  { %v2477_v2 = vmul.f32 0.03125, %v2473_v0 }
0x1b05   :  { %v2480_v3 = vadd.f32 1e-05, %v2478_v63 }
0x1b06   :  { %v2479_v16 = vadd.f32 1e-05, %v2477_v2  ;;  %v2794_v2 = vld [vmem:[%s3824_s3 + $0x6] ss:$0 sm:$0xff] }
0x1b07   :  { %3225 = vrsqrt.f32 %v2480_v3 }
0x1b08   :  { %3227 = vrsqrt.f32 %v2479_v16 }
0x1b11   :  { %v3226_v17 = vpop.eup %3225 }
0x1b12   :  { %v3228_v56 = vpop.eup %3227  ;;  %v2484_v25 = vmul.f32 %v3226_v17, %v2468_v45 }
0x1b13   :  { %v2483_v5 = vmul.f32 %v3228_v56, %v2467_v46  ;;  %v2660_v46 = vld [vmem:[%s3824_s3 + $0x7] sm:$0x1] }
0x1b14   :  { %v2490_v6 = vmul.f32 %v2488_v4, %v2484_v25  ;;  %3147 = vpush %v2660_v46 }
0x1b15   :  { %v2489_v7 = vmul.f32 %v2488_v4, %v2483_v5 }
0x1b16   :  { %v2496_v8 = vadd.f32 %v2494_v24, %v2490_v6 }
0x1b17   :  { %v2495_v9 = vadd.f32 %v2494_v24, %v2489_v7 }
0x1b18   :  { %2498 = vst.msk [vmem:[#allocation4 + $0x8] sm:$0xff] %vm188_vm1, %v2496_v8 }
0x1b19   :  { %3068 = vmatprep.mubr.msk.f32.mxu0 %vm188_vm1, %v2495_v9  ;;  %2497 = vst.msk [vmem:[#allocation4] sm:$0xff] %vm188_vm1, %v2495_v9 }
0x1b1a   :  { %3069 = vmatmul.mubr.msk.f32.vlgmr.msra.gmra.mrb[26].mxu0 %vm188_vm1, %v2496_v8 }
0x1bed   :  { %v3070_v10 = vpop.f32.mrb[26].mxu0 }
0x1bee   :  { %v2586_v11 = vadd.f32 %v3070_v10, %v2789_v36  ;;  %v2580_v38 = vpop.f32.mrb[27].mxu0 }
0x1bef   :  { %v2581_v15 = vadd.f32 %v2789_v36, %v2580_v38 }
0x1bf0   :  { %v2592_v12 = vmul.f32 0.044715, %v2586_v11  ;;  %v2590_v29 = vmul.f32 0.5, %v2586_v11 }
0x1bf1   :  { %v2591_v13 = vmul.f32 0.044715, %v2581_v15  ;;  %v2589_v32 = vmul.f32 0.5, %v2581_v15 }
0x1bf2   :  { %v2594_v14 = vmul.f32 %v2592_v12, %v2586_v11 }
0x1bf3   :  { %v2593_v18 = vmul.f32 %v2591_v13, %v2581_v15 }
0x1bf4   :  { %v2596_v19 = vmul.f32 %v2594_v14, %v2586_v11 }
0x1bf5   :  { %v2595_v20 = vmul.f32 %v2593_v18, %v2581_v15 }
0x1bf6   :  { %v2598_v21 = vadd.f32 %v2596_v19, %v2586_v11 }
0x1bf7   :  { %v2597_v22 = vadd.f32 %v2595_v20, %v2581_v15 }
0x1bf8   :  { %v2600_v23 = vmul.f32 0.7978846, %v2598_v21 }
0x1bf9   :  { %v2599_v27 = vmul.f32 0.7978846, %v2597_v22 }
0x1bfa   :  { %3229 = vtanh.f32 %v2600_v23 }
0x1bfb   :  { %3231 = vtanh.f32 %v2599_v27 }
0x1c04   :  { %v3230_v28 = vpop.eup %3229 }
0x1c05   :  { %v3232_v37 = vpop.eup %3231  ;;  %v2604_v30 = vadd.f32 1.0, %v3230_v28 }
0x1c06   :  { %v2603_v33 = vadd.f32 1.0, %v3232_v37 }
0x1c07   :  { %v2606_v34 = vmul.f32 %v2604_v30, %v2590_v29 }
0x1c08   :  { %v2605_v31 = vmul.f32 %v2603_v33, %v2589_v32 }
0x1c09   :  { %v2612_v49 = vsel %vm188_vm1, %v2606_v34, 0.0 }
0x1c0a   :  { %2613 = vadd.xlane.f32.xlu1 %v2612_v49  ;;  %v2609_v35 = vsel %vm188_vm1, %v2605_v31, 0.0 }
0x1c0b   :  { %2610 = vadd.xlane.f32.xlu0 %v2609_v35 }
0x1c97   :  { %v2614_v39 = vpop.xlane.xlu1 %2613 }
0x1c98   :  { %v2616_v40 = vmul.f32 0.03125, %v2614_v39  ;;  %v2611_v52 = vpop.xlane.xlu0 %2610 }
0x1c99   :  { %v2615_v51 = vmul.f32 0.03125, %v2611_v52 }
0x1c9a   :  { %v2618_v41 = vsub.f32 %v2606_v34, %v2616_v40 }
0x1c9b   :  { %v2617_v42 = vsub.f32 %v2605_v31, %v2615_v51 }
0x1c9c   :  { %v2620_v43 = vmul.f32 %v2618_v41, %v2618_v41 }
0x1c9d   :  { %v2619_v26 = vmul.f32 %v2617_v42, %v2617_v42 }
0x1c9e   :  { %v2624_v44 = vsel %vm188_vm1, %v2620_v43, 0.0 }
0x1c9f   :  { %2625 = vadd.xlane.f32.xlu1 %v2624_v44  ;;  %v2621_v45 = vsel %vm188_vm1, %v2619_v26, 0.0 }
0x1ca0   :  { %2622 = vadd.xlane.f32.xlu0 %v2621_v45 }
0x1d2c   :  { %v2626_v53 = vpop.xlane.xlu1 %2625 }
0x1d2d   :  { %v2628_v1 = vmul.f32 0.03125, %v2626_v53  ;;  %v2623_v50 = vpop.xlane.xlu0 %2622 }
0x1d2e   :  { %v2627_v55 = vmul.f32 0.03125, %v2623_v50 }
0x1d2f   :  { %v2630_v57 = vadd.f32 1e-05, %v2628_v1 }
0x1d30   :  { %v2629_v58 = vadd.f32 1e-05, %v2627_v55 }
0x1d31   :  { %3233 = vrsqrt.f32 %v2630_v57 }
0x1d32   :  { %3235 = vrsqrt.f32 %v2629_v58 }
0x1d3b   :  { %v3234_v59 = vpop.eup %3233 }
0x1d3c   :  { %v3236_v54 = vpop.eup %3235  ;;  %v2634_v61 = vmul.f32 %v3234_v59, %v2618_v41 }
0x1d3d   :  { %v2633_v63 = vmul.f32 %v3236_v54, %v2617_v42 }
0x1d3e   :  { %v2640_v0 = vmul.f32 %v2792_v60, %v2634_v61 }
0x1d3f   :  { %v2639_v3 = vmul.f32 %v2792_v60, %v2633_v63 }
0x1d40   :  { %v2646_v16 = vadd.f32 %v2793_v62, %v2640_v0 }
0x1d41   :  { %v2645_v4 = vadd.f32 %v2793_v62, %v2639_v3 }
0x1d42   :  { %v2653_v17 = vmul.f32 %v2794_v2, %v2646_v16 }
0x1d43   :  { %v2652_v56 = vmul.f32 %v2794_v2, %v2645_v4 }
0x1d44   :  { %v2657_v25 = vsel %vm188_vm1, %v2653_v17, 0.0 }
0x1d45   :  { %2658 = vadd.xlane.f32.xlu1 %v2657_v25  ;;  %v2654_v24 = vsel %vm188_vm1, %v2652_v56, 0.0 }
0x1d46   :  { %2655 = vadd.xlane.f32.xlu0 %v2654_v24 }
0x1d47   :  { %3248 = shalt.err (!%p3245_p4)
}
0x1d48   :  { %s3249_s14 = scalar_lea.hbm %s3831_s10, 256 }
0x1d49   :  { %p3250_p5 = scmp.ne.s32.totalorder %s3831_s10, %s3249_s14  ;;  %p3253_p6 = scmp.lt.u32.totalorder %s3249_s14, %s3831_s10 }
0x1d4b   :  { %p3255_p7 = pnand %p3253_p6, %p3250_p5 }
0x1d4d   :  { %3258 = shalt.err (!%p3255_p7)
}
0x1d4e   :  { %s3294_s22 = smov 128   ;;  %s3295_s7 = smov 8   ;;  %v2670_v5 = vand.u32 127, %v998_v47  ;;  %vm2679_vm4 = vcmask 1041409   ;;  %vm2682_vm5 = vcmask 58368  }
0x1d4f   :  { %2705 = dma.vmem_to_hbm [thread:$0]  %s2700_s11, 256, %s3831_s10, [#allocation5], %s3294_s22, %s3294_s22, %s3295_s7  }
0x1d50   :  { %s3148_s18 = spop %3147  ;;  %v2673_v7 = vsub.s32 %v2670_v5, %v3507_v48  ;;  %s3296_s19 = smov [#allocation2]  }
0x1d51   :  { %v2663_v6 = vstv %s3148_s18  ;;  %s2690_s20 = sshll.u32 %s3296_s19, 4  ;;  %s2691_s20 = int_to_ptr.vmem [resolvable:$true] %s2690_s20 }
0x1d52   :  { %s3259_s10 = scalar_lea.vmem %s2691_s20, 32  ;;  %p3264_p9 = scmp.lt.s32.totalorder %s2691_s20, %s2691_s20 }
0x1d53   :  { %p3260_p8 = scmp.ne.s32.totalorder %s2691_s20, %s3259_s10  ;;  %p3265_p10 = scmp.lt.s32.totalorder %s3259_s10, %s3259_s10 }
0x1d55   :  { %p3266_p11 = por %p3265_p10, %p3264_p9 }
0x1d57   :  { %p3267_p12 = pnand %p3266_p11, %p3260_p8 }
0x1dd2   :  { %v2659_v8 = vpop.xlane.xlu1 %2658 }
0x1dd3   :  { %v2666_v9 = vadd.f32 %v2663_v6, %v2659_v8  ;;  %v2656_v36 = vpop.xlane.xlu0 %2655 }
0x1dd4   :  { %v2665_v10 = vadd.f32 %v2663_v6, %v2656_v36 }
0x1dd5   :  { %v2678_v11 = vrot.slane %v2666_v9, %v2673_v7 }
0x1dd6   :  { %v2674_v38 = vrot.slane %v2665_v10, %v2673_v7 }
0x1dd8   :  { %v2680_v15 = vsel %vm2679_vm4, %v2678_v11, %v2674_v38 }
0x1dd9   :  { %2683 = vst.msk [vmem:[#allocation2] sm:$0x3] %vm2682_vm5, %v2680_v15 }
0x1dda   :  { %3270 = shalt.err (!%p3267_p12)
}
0x1ddb   :  { %s3271_s4 = scalar_lea.hbm %s3830_s9, 32 }
0x1ddc   :  { %p3272_p13 = scmp.ne.s32.totalorder %s3830_s9, %s3271_s4  ;;  %p3275_p0 = scmp.lt.u32.totalorder %s3271_s4, %s3830_s9 }
0x1dde   :  { %p3277_p1 = pnand %p3275_p0, %p3272_p13 }
0x1de0   :  { %3280 = shalt.err (!%p3277_p1)
}
0x1de1   :  { %2693 = dma.vmem_to_hbm [thread:$0]  %s2691_s20, 32, %s3830_s9, [#allocation3]  }
0x1de2   :  { %3281 = dma.done.wait [#allocation3], 32  }
0x1de3   :  { %3282 = vsyncadd [#allocation3], 4294967264 }
0x1de4   :  { %3283 = dma.done.wait [#allocation5], 256  }
0x1de5   :  { %3284 = vsyncadd [#allocation5], 4294967040 }
0x1de6   :  { %2712 = vsyncpa [#allocation3], 1 }
0x1de7   :  { %2713 = vsyncpa [#allocation5], 1 }

</bundles_post_ra>
